<compile_context>
chip_gen: v7x
topology: tpu7x:2x2x1
jax: 0.10.0
libtpu: 0.0.40
codegen_flags: <defaults>
</compile_context>

<pallas_src>
import functools
import math

import jax
import jax.numpy as jnp
from jax import lax
from jax.experimental import pallas as pl
from jax.experimental.pallas import tpu as pltpu


# ---------------------------------------------------------------------------
# Small helpers mirroring the torch module
# ---------------------------------------------------------------------------
def _triple(v):
    if isinstance(v, (tuple, list)):
        assert len(v) == 3
        return tuple(int(x) for x in v)
    return (int(v),) * 3


def _size3_to_spatial_temporal(size, fill_value):
    k = _triple(size)
    return (fill_value, k[1], k[2]), (k[0], fill_value, fill_value)


# ---------------------------------------------------------------------------
# Pallas kernel: fused conv3d (no bias) + BN shift + ReLU.
# One grid step = (batch b, output depth d, depth-kernel tap t).
#   shift_ref : (1, Cout)            f32   BN shift (scale already in weights)
#   w_ref     : (kh, kw, Cin, Cout)         weight slab for depth tap t
#   x_ref     : (Hp, Wp, Cin)               padded input plane at depth d*sd+t
#   o_ref     : (Ho, Wo, Cout)              output block for (b, d)
#   acc_ref   : (Ho*Wo, Cout)         f32   VMEM accumulator across taps
# ---------------------------------------------------------------------------
def _conv3d_bn_relu_kernel(shift_ref, w_ref, x_ref, o_ref, acc_ref, *,
                           kd, kspatial, strides_hw, out_hw):
    kh, kw = kspatial
    sh, sw = strides_hw
    ho, wo = out_hw
    cin = x_ref.shape[-1]
    cout = o_ref.shape[-1]
    t = pl.program_id(2)

    @pl.when(t == 0)
    def _init():
        acc_ref[...] = jnp.zeros_like(acc_ref)

    # One input depth plane, loaded from VMEM once per step.
    x = x_ref[...]                                  # (Hp, Wp, Cin)

    acc = acc_ref[...]
    for hh in range(kh):
        for ww in range(kw):
            if sh == 1 and sw == 1:
                win = lax.slice(x, (hh, ww, 0), (hh + ho, ww + wo, cin))
            else:
                win = lax.slice(
                    x, (hh, ww, 0),
                    (hh + (ho - 1) * sh + 1, ww + (wo - 1) * sw + 1, cin),
                    (sh, sw, 1))
            lhs = win.reshape(ho * wo, cin)          # all output rows at once
            acc = acc + jnp.dot(lhs, w_ref[hh, ww],
                                preferred_element_type=jnp.float32)
    acc_ref[...] = acc

    @pl.when(t == kd - 1)
    def _finalize():
        out = jnp.maximum(acc_ref[...] + shift_ref[...], 0.0)
        o_ref[...] = out.reshape(ho, wo, cout).astype(o_ref.dtype)


# ---------------------------------------------------------------------------
# Wrapper: one fused conv + BN + ReLU stage (channels-last in/out)
# ---------------------------------------------------------------------------
def _fused_conv_bn_relu(x_ndhwc, w_oidhw, gamma, beta, mean, var, *,
                        stride, padding, eps=1e-5):
    sd, sh, sw = _triple(stride)
    pd, ph, pw = _triple(padding)
    cout, cin, kd, kh, kw = w_oidhw.shape

    # Inference-form BatchNorm folded into the conv weights (f32 fold).
    scale = (gamma / jnp.sqrt(var + eps)).astype(jnp.float32)
    shift = (beta - mean * scale).reshape(1, cout).astype(jnp.float32)
    # (Cout, Cin, kd, kh, kw) -> (kd, kh, kw, Cin, Cout), scale folded in.
    w = (jnp.transpose(w_oidhw, (2, 3, 4, 1, 0)) *
         scale.reshape(1, 1, 1, 1, cout)).astype(x_ndhwc.dtype)

    # Conv zero padding (one small HBM pass; see TODO above).
    x = jnp.pad(x_ndhwc, ((0, 0), (pd, pd), (ph, ph), (pw, pw), (0, 0)))
    n, dp, hp, wp, _ = x.shape
    do = (dp - kd) // sd + 1
    ho = (hp - kh) // sh + 1
    wo = (wp - kw) // sw + 1

    kernel = functools.partial(_conv3d_bn_relu_kernel,
                               kd=kd, kspatial=(kh, kw),
                               strides_hw=(sh, sw), out_hw=(ho, wo))

    return pl.pallas_call(
        kernel,
        out_shape=jax.ShapeDtypeStruct((n, do, ho, wo, cout), x_ndhwc.dtype),
        grid=(n, do, kd),
        in_specs=[
            # BN shift, resident (constant block index -> fetched once).
            pl.BlockSpec((1, cout), lambda b, d, t: (0, 0)),
            # Weight slab for the current depth tap.
            pl.BlockSpec((None, kh, kw, cin, cout),
                         lambda b, d, t: (t, 0, 0, 0, 0)),
            # One padded input depth plane: element index d*sd + t.
            pl.BlockSpec((None, None, hp, wp, cin),
                         lambda b, d, t, sd=sd: (b, d * sd + t, 0, 0, 0)),
        ],
        out_specs=pl.BlockSpec((None, None, ho, wo, cout),
                               lambda b, d, t: (b, d, 0, 0, 0)),
        scratch_shapes=[pltpu.VMEM((ho * wo, cout), jnp.float32)],
        compiler_params=pltpu.CompilerParams(
            dimension_semantics=("parallel", "parallel", "arbitrary")),
    )(shift, w, x)


# ---------------------------------------------------------------------------
# STConv3D forward (public interface: PyTorch NCDHW layout)
# ---------------------------------------------------------------------------
def stconv3d_forward(x_ncdhw, params, *, stride=1, padding=0,
                     separable=False, eps=1e-5):
    # NCDHW -> NDHWC once for the whole module.
    x = jnp.transpose(x_ncdhw, (0, 2, 3, 4, 1))
    if separable:
        sp_s, tm_s = _size3_to_spatial_temporal(stride, 1)
        sp_p, tm_p = _size3_to_spatial_temporal(padding, 0)
        x = _fused_conv_bn_relu(x, params["conv1_w"], params["bn1_gamma"],
                                params["bn1_beta"], params["bn1_mean"],
                                params["bn1_var"],
                                stride=sp_s, padding=sp_p, eps=eps)
        x = _fused_conv_bn_relu(x, params["conv2_w"], params["bn2_gamma"],
                                params["bn2_beta"], params["bn2_mean"],
                                params["bn2_var"],
                                stride=tm_s, padding=tm_p, eps=eps)
    else:
        x = _fused_conv_bn_relu(x, params["conv1_w"], params["bn1_gamma"],
                                params["bn1_beta"], params["bn1_mean"],
                                params["bn1_var"],
                                stride=stride, padding=padding, eps=eps)
    # NDHWC -> NCDHW.
    return jnp.transpose(x, (0, 4, 1, 2, 3))


# ---------------------------------------------------------------------------
# Deterministic parameter init + pure-JAX reference (correctness check only)
# ---------------------------------------------------------------------------
def _init_params(key, input_dim, output_dim, kernel_size, separable):
    def conv_w(k, co, ci, kshape):
        fan_in = ci * kshape[0] * kshape[1] * kshape[2]
        return (jax.random.normal(k, (co, ci) + tuple(kshape), jnp.float32)
                / math.sqrt(fan_in))

    def bn(k, c, prefix):
        k1, k2, k3, k4 = jax.random.split(k, 4)
        return {
            f"{prefix}_gamma": jax.random.uniform(k1, (c,), jnp.float32, 0.5, 1.5),
            f"{prefix}_beta": 0.1 * jax.random.normal(k2, (c,), jnp.float32),
            f"{prefix}_mean": 0.1 * jax.random.normal(k3, (c,), jnp.float32),
            f"{prefix}_var": jax.random.uniform(k4, (c,), jnp.float32, 0.5, 1.5),
        }

    params = {}
    if separable:
        sp_k, tm_k = _size3_to_spatial_temporal(kernel_size, 1)
        k1, k2, k3, k4 = jax.random.split(key, 4)
        params["conv1_w"] = conv_w(k1, output_dim, input_dim, sp_k)
        params.update(bn(k2, output_dim, "bn1"))
        params["conv2_w"] = conv_w(k3, output_dim, output_dim, tm_k)
        params.update(bn(k4, output_dim, "bn2"))
    else:
        k1, k2 = jax.random.split(key, 2)
        params["conv1_w"] = conv_w(k1, output_dim, input_dim, _triple(kernel_size))
        params.update(bn(k2, output_dim, "bn1"))
    return params


def _reference(x_ncdhw, params, *, stride, padding, separable, eps=1e-5):
    def block(x, w, gamma, beta, mean, var, st, pd):
        st3, pd3 = _triple(st), _triple(pd)
        y = lax.conv_general_dilated(
            x, w, window_strides=st3,
            padding=tuple((p, p) for p in pd3),
            dimension_numbers=("NCDHW", "OIDHW", "NCDHW"),
            precision=lax.Precision.HIGHEST)
        sc = gamma / jnp.sqrt(var + eps)
        sh = beta - mean * sc
        y = y * sc.reshape(1, -1, 1, 1, 1) + sh.reshape(1, -1, 1, 1, 1)
        return jnp.maximum(y, 0.0)

    if separable:
        sp_s, tm_s = _size3_to_spatial_temporal(stride, 1)
        sp_p, tm_p = _size3_to_spatial_temporal(padding, 0)
        y = block(x_ncdhw, params["conv1_w"], params["bn1_gamma"],
                  params["bn1_beta"], params["bn1_mean"], params["bn1_var"],
                  sp_s, sp_p)
        return block(y, params["conv2_w"], params["bn2_gamma"],
                     params["bn2_beta"], params["bn2_mean"], params["bn2_var"],
                     tm_s, tm_p)
    return block(x_ncdhw, params["conv1_w"], params["bn1_gamma"],
                 params["bn1_beta"], params["bn1_mean"], params["bn1_var"],
                 stride, padding)


# ---------------------------------------------------------------------------
if __name__ == "__main__":
    key = jax.random.PRNGKey(0)

    configs = [
        # (separable, Cin, Cout, kernel, stride, padding, x shape NCDHW)
        (False, 8, 16, 3, 1, 1, (2, 8, 8, 16, 16)),   # plain 3x3x3 conv
        (False, 8, 16, 1, 1, 0, (2, 8, 8, 16, 16)),   # pointwise conv
        (True,  8, 16, 3, 2, 1, (2, 8, 8, 16, 16)),   # separable spatial+temporal
    ]

    ok = True
    for sep, cin, cout, ks, st, pd, shp in configs:
        key, kx, kp = jax.random.split(key, 3)
        x = jax.random.normal(kx, shp, dtype=jnp.float32)       # NCDHW
        params = _init_params(kp, cin, cout, ks, sep)

        out = stconv3d_forward(x, params, stride=st, padding=pd, separable=sep)
        out = jax.block_until_ready(out)
        ref = _reference(x, params, stride=st, padding=pd, separable=sep)

        if out.shape != ref.shape or not bool(
                jnp.allclose(out, ref, rtol=2e-2, atol=2e-2)):
            ok = False
            err = (float(jnp.max(jnp.abs(out - ref)))
                   if out.shape == ref.shape else float("nan"))
            print(f"MISMATCH separable={sep} k={ks} stride={st} pad={pd} "
                  f"shape={out.shape} vs {ref.shape} max_err={err}")

    if ok:
        print("KERNEL_OK")
</pallas_src>

<mosaic_0001>
module attributes {stable_mosaic.version = 11 : i64} {
  func.func @_conv3d_bn_relu_kernel(%arg0: i32, %arg1: i32, %arg2: i32, %arg3: memref<1x16xf32, #tpu.memory_space<vmem>>, %arg4: memref<1x3x3x8x16xf32, #tpu.memory_space<vmem>>, %arg5: memref<1x1x18x18x8xf32, #tpu.memory_space<vmem>>, %arg6: memref<1x1x16x16x16xf32, #tpu.memory_space<vmem>>, %arg7: memref<256x16xf32, #tpu.memory_space<vmem>>) attributes {dimension_semantics = [#tpu.dimension_semantics<parallel>, #tpu.dimension_semantics<parallel>, #tpu.dimension_semantics<arbitrary>], iteration_bounds = array<i64: 2, 8, 3>, scalar_prefetch = 0 : i64, scratch_operands = 1 : i64, tpu.core_type = #tpu.core_type<tc>, window_params = [{pipeline_mode = #tpu.pipeline_mode<synchronous>, transform_indices = @transform_0, window_bounds = array<i64: 1, 16>}, {transform_indices = @transform_1, window_bounds = array<i64: 1, 3, 3, 8, 16>}, {transform_indices = @transform_2, window_bounds = array<i64: 1, 1, 18, 18, 8>}, {transform_indices = @transform_3, window_bounds = array<i64: 1, 1, 16, 16, 16>}]} {
    %c0_i32 = arith.constant 0 : i32
    %0 = arith.cmpi eq, %arg2, %c0_i32 : i32
    %1 = arith.extui %0 : i1 to i32
    %c0_i32_0 = arith.constant 0 : i32
    %2 = arith.cmpi ne, %1, %c0_i32_0 : i32
    scf.if %2 {
      %cst_61 = arith.constant 0.000000e+00 : f32
      %64 = vector.broadcast %cst_61 : f32 to vector<256x16xf32>
      %c0_62 = arith.constant 0 : index
      %c0_63 = arith.constant 0 : index
      %65 = vector.load %arg7[%c0_62, %c0_63] : memref<256x16xf32, #tpu.memory_space<vmem>>, vector<256x16xf32>
      tpu.vector_store %arg7[%c0_62, %c0_63], %64 {strides = array<i32>} : memref<256x16xf32, #tpu.memory_space<vmem>>, vector<256x16xf32>,
    } else {
    }
    %c0 = arith.constant 0 : index
    %c0_1 = arith.constant 0 : index
    %c0_2 = arith.constant 0 : index
    %c0_3 = arith.constant 0 : index
    %c0_4 = arith.constant 0 : index
    %3 = vector.load %arg5[%c0, %c0_1, %c0_2, %c0_3, %c0_4] : memref<1x1x18x18x8xf32, #tpu.memory_space<vmem>>, vector<1x1x18x18x8xf32>
    %4 = vector.shape_cast %3 : vector<1x1x18x18x8xf32> to vector<18x18x8xf32>
    %c0_5 = arith.constant 0 : index
    %c0_6 = arith.constant 0 : index
    %5 = vector.load %arg7[%c0_5, %c0_6] : memref<256x16xf32, #tpu.memory_space<vmem>>, vector<256x16xf32>
    %6 = vector.extract_strided_slice %4 {offsets = [0, 0, 0], sizes = [16, 16, 8], strides = [1, 1, 1]} : vector<18x18x8xf32> to vector<16x16x8xf32>
    %7 = vector.shape_cast %6 : vector<16x16x8xf32> to vector<256x8xf32>
    %c0_7 = arith.constant 0 : index
    %c0_8 = arith.constant 0 : index
    %c0_9 = arith.constant 0 : index
    %c0_10 = arith.constant 0 : index
    %c0_11 = arith.constant 0 : index
    %8 = vector.load %arg4[%c0_7, %c0_8, %c0_9, %c0_10, %c0_11] : memref<1x3x3x8x16xf32, #tpu.memory_space<vmem>>, vector<1x1x1x8x16xf32>
    %9 = vector.shape_cast %8 : vector<1x1x1x8x16xf32> to vector<8x16xf32>
    %cst = arith.constant dense<0.000000e+00> : vector<256x16xf32>
    %10 = tpu.matmul %7, %9, %cst {dimension_numbers = #tpu.dot_dimension_numbers<[1], [0], [0], [1], [0, 0, 1, 1], [], []>} : vector<256x8xf32>, vector<8x16xf32>, vector<256x16xf32> -> vector<256x16xf32>
    %11 = arith.addf %5, %10 : vector<256x16xf32>
    %12 = vector.extract_strided_slice %4 {offsets = [0, 1, 0], sizes = [16, 16, 8], strides = [1, 1, 1]} : vector<18x18x8xf32> to vector<16x16x8xf32>
    %13 = vector.shape_cast %12 : vector<16x16x8xf32> to vector<256x8xf32>
    %c0_12 = arith.constant 0 : index
    %c0_13 = arith.constant 0 : index
    %c1 = arith.constant 1 : index
    %c0_14 = arith.constant 0 : index
    %c0_15 = arith.constant 0 : index
    %14 = vector.load %arg4[%c0_12, %c0_13, %c1, %c0_14, %c0_15] : memref<1x3x3x8x16xf32, #tpu.memory_space<vmem>>, vector<1x1x1x8x16xf32>
    %15 = vector.shape_cast %14 : vector<1x1x1x8x16xf32> to vector<8x16xf32>
    %cst_16 = arith.constant dense<0.000000e+00> : vector<256x16xf32>
    %16 = tpu.matmul %13, %15, %cst_16 {dimension_numbers = #tpu.dot_dimension_numbers<[1], [0], [0], [1], [0, 0, 1, 1], [], []>} : vector<256x8xf32>, vector<8x16xf32>, vector<256x16xf32> -> vector<256x16xf32>
    %17 = arith.addf %11, %16 : vector<256x16xf32>
    %18 = vector.extract_strided_slice %4 {offsets = [0, 2, 0], sizes = [16, 16, 8], strides = [1, 1, 1]} : vector<18x18x8xf32> to vector<16x16x8xf32>
    %19 = vector.shape_cast %18 : vector<16x16x8xf32> to vector<256x8xf32>
    %c0_17 = arith.constant 0 : index
    %c0_18 = arith.constant 0 : index
    %c2 = arith.constant 2 : index
    %c0_19 = arith.constant 0 : index
    %c0_20 = arith.constant 0 : index
    %20 = vector.load %arg4[%c0_17, %c0_18, %c2, %c0_19, %c0_20] : memref<1x3x3x8x16xf32, #tpu.memory_space<vmem>>, vector<1x1x1x8x16xf32>
    %21 = vector.shape_cast %20 : vector<1x1x1x8x16xf32> to vector<8x16xf32>
    %cst_21 = arith.constant dense<0.000000e+00> : vector<256x16xf32>
    %22 = tpu.matmul %19, %21, %cst_21 {dimension_numbers = #tpu.dot_dimension_numbers<[1], [0], [0], [1], [0, 0, 1, 1], [], []>} : vector<256x8xf32>, vector<8x16xf32>, vector<256x16xf32> -> vector<256x16xf32>
    %23 = arith.addf %17, %22 : vector<256x16xf32>
    %24 = vector.extract_strided_slice %4 {offsets = [1, 0, 0], sizes = [16, 16, 8], strides = [1, 1, 1]} : vector<18x18x8xf32> to vector<16x16x8xf32>
    %25 = vector.shape_cast %24 : vector<16x16x8xf32> to vector<256x8xf32>
    %c0_22 = arith.constant 0 : index
    %c1_23 = arith.constant 1 : index
    %c0_24 = arith.constant 0 : index
    %c0_25 = arith.constant 0 : index
    %c0_26 = arith.constant 0 : index
    %26 = vector.load %arg4[%c0_22, %c1_23, %c0_24, %c0_25, %c0_26] : memref<1x3x3x8x16xf32, #tpu.memory_space<vmem>>, vector<1x1x1x8x16xf32>
    %27 = vector.shape_cast %26 : vector<1x1x1x8x16xf32> to vector<8x16xf32>
    %cst_27 = arith.constant dense<0.000000e+00> : vector<256x16xf32>
    %28 = tpu.matmul %25, %27, %cst_27 {dimension_numbers = #tpu.dot_dimension_numbers<[1], [0], [0], [1], [0, 0, 1, 1], [], []>} : vector<256x8xf32>, vector<8x16xf32>, vector<256x16xf32> -> vector<256x16xf32>
    %29 = arith.addf %23, %28 : vector<256x16xf32>
    %30 = vector.extract_strided_slice %4 {offsets = [1, 1, 0], sizes = [16, 16, 8], strides = [1, 1, 1]} : vector<18x18x8xf32> to vector<16x16x8xf32>
    %31 = vector.shape_cast %30 : vector<16x16x8xf32> to vector<256x8xf32>
    %c0_28 = arith.constant 0 : index
    %c1_29 = arith.constant 1 : index
    %c1_30 = arith.constant 1 : index
    %c0_31 = arith.constant 0 : index
    %c0_32 = arith.constant 0 : index
    %32 = vector.load %arg4[%c0_28, %c1_29, %c1_30, %c0_31, %c0_32] : memref<1x3x3x8x16xf32, #tpu.memory_space<vmem>>, vector<1x1x1x8x16xf32>
    %33 = vector.shape_cast %32 : vector<1x1x1x8x16xf32> to vector<8x16xf32>
    %cst_33 = arith.constant dense<0.000000e+00> : vector<256x16xf32>
    %34 = tpu.matmul %31, %33, %cst_33 {dimension_numbers = #tpu.dot_dimension_numbers<[1], [0], [0], [1], [0, 0, 1, 1], [], []>} : vector<256x8xf32>, vector<8x16xf32>, vector<256x16xf32> -> vector<256x16xf32>
    %35 = arith.addf %29, %34 : vector<256x16xf32>
    %36 = vector.extract_strided_slice %4 {offsets = [1, 2, 0], sizes = [16, 16, 8], strides = [1, 1, 1]} : vector<18x18x8xf32> to vector<16x16x8xf32>
    %37 = vector.shape_cast %36 : vector<16x16x8xf32> to vector<256x8xf32>
    %c0_34 = arith.constant 0 : index
    %c1_35 = arith.constant 1 : index
    %c2_36 = arith.constant 2 : index
    %c0_37 = arith.constant 0 : index
    %c0_38 = arith.constant 0 : index
    %38 = vector.load %arg4[%c0_34, %c1_35, %c2_36, %c0_37, %c0_38] : memref<1x3x3x8x16xf32, #tpu.memory_space<vmem>>, vector<1x1x1x8x16xf32>
    %39 = vector.shape_cast %38 : vector<1x1x1x8x16xf32> to vector<8x16xf32>
    %cst_39 = arith.constant dense<0.000000e+00> : vector<256x16xf32>
    %40 = tpu.matmul %37, %39, %cst_39 {dimension_numbers = #tpu.dot_dimension_numbers<[1], [0], [0], [1], [0, 0, 1, 1], [], []>} : vector<256x8xf32>, vector<8x16xf32>, vector<256x16xf32> -> vector<256x16xf32>
    %41 = arith.addf %35, %40 : vector<256x16xf32>
    %42 = vector.extract_strided_slice %4 {offsets = [2, 0, 0], sizes = [16, 16, 8], strides = [1, 1, 1]} : vector<18x18x8xf32> to vector<16x16x8xf32>
    %43 = vector.shape_cast %42 : vector<16x16x8xf32> to vector<256x8xf32>
    %c0_40 = arith.constant 0 : index
    %c2_41 = arith.constant 2 : index
    %c0_42 = arith.constant 0 : index
    %c0_43 = arith.constant 0 : index
    %c0_44 = arith.constant 0 : index
    %44 = vector.load %arg4[%c0_40, %c2_41, %c0_42, %c0_43, %c0_44] : memref<1x3x3x8x16xf32, #tpu.memory_space<vmem>>, vector<1x1x1x8x16xf32>
    %45 = vector.shape_cast %44 : vector<1x1x1x8x16xf32> to vector<8x16xf32>
    %cst_45 = arith.constant dense<0.000000e+00> : vector<256x16xf32>
    %46 = tpu.matmul %43, %45, %cst_45 {dimension_numbers = #tpu.dot_dimension_numbers<[1], [0], [0], [1], [0, 0, 1, 1], [], []>} : vector<256x8xf32>, vector<8x16xf32>, vector<256x16xf32> -> vector<256x16xf32>
    %47 = arith.addf %41, %46 : vector<256x16xf32>
    %48 = vector.extract_strided_slice %4 {offsets = [2, 1, 0], sizes = [16, 16, 8], strides = [1, 1, 1]} : vector<18x18x8xf32> to vector<16x16x8xf32>
    %49 = vector.shape_cast %48 : vector<16x16x8xf32> to vector<256x8xf32>
    %c0_46 = arith.constant 0 : index
    %c2_47 = arith.constant 2 : index
    %c1_48 = arith.constant 1 : index
    %c0_49 = arith.constant 0 : index
    %c0_50 = arith.constant 0 : index
    %50 = vector.load %arg4[%c0_46, %c2_47, %c1_48, %c0_49, %c0_50] : memref<1x3x3x8x16xf32, #tpu.memory_space<vmem>>, vector<1x1x1x8x16xf32>
    %51 = vector.shape_cast %50 : vector<1x1x1x8x16xf32> to vector<8x16xf32>
    %cst_51 = arith.constant dense<0.000000e+00> : vector<256x16xf32>
    %52 = tpu.matmul %49, %51, %cst_51 {dimension_numbers = #tpu.dot_dimension_numbers<[1], [0], [0], [1], [0, 0, 1, 1], [], []>} : vector<256x8xf32>, vector<8x16xf32>, vector<256x16xf32> -> vector<256x16xf32>
    %53 = arith.addf %47, %52 : vector<256x16xf32>
    %54 = vector.extract_strided_slice %4 {offsets = [2, 2, 0], sizes = [16, 16, 8], strides = [1, 1, 1]} : vector<18x18x8xf32> to vector<16x16x8xf32>
    %55 = vector.shape_cast %54 : vector<16x16x8xf32> to vector<256x8xf32>
    %c0_52 = arith.constant 0 : index
    %c2_53 = arith.constant 2 : index
    %c2_54 = arith.constant 2 : index
    %c0_55 = arith.constant 0 : index
    %c0_56 = arith.constant 0 : index
    %56 = vector.load %arg4[%c0_52, %c2_53, %c2_54, %c0_55, %c0_56] : memref<1x3x3x8x16xf32, #tpu.memory_space<vmem>>, vector<1x1x1x8x16xf32>
    %57 = vector.shape_cast %56 : vector<1x1x1x8x16xf32> to vector<8x16xf32>
    %cst_57 = arith.constant dense<0.000000e+00> : vector<256x16xf32>
    %58 = tpu.matmul %55, %57, %cst_57 {dimension_numbers = #tpu.dot_dimension_numbers<[1], [0], [0], [1], [0, 0, 1, 1], [], []>} : vector<256x8xf32>, vector<8x16xf32>, vector<256x16xf32> -> vector<256x16xf32>
    %59 = arith.addf %53, %58 : vector<256x16xf32>
    %c0_58 = arith.constant 0 : index
    %c0_59 = arith.constant 0 : index
    %60 = vector.load %arg7[%c0_58, %c0_59] : memref<256x16xf32, #tpu.memory_space<vmem>>, vector<256x16xf32>
    tpu.vector_store %arg7[%c0_58, %c0_59], %59 {strides = array<i32>} : memref<256x16xf32, #tpu.memory_space<vmem>>, vector<256x16xf32>,
    %c2_i32 = arith.constant 2 : i32
    %61 = arith.cmpi eq, %arg2, %c2_i32 : i32
    %62 = arith.extui %61 : i1 to i32
    %c0_i32_60 = arith.constant 0 : i32
    %63 = arith.cmpi ne, %62, %c0_i32_60 : i32
    scf.if %63 {
      %c0_61 = arith.constant 0 : index
      %c0_62 = arith.constant 0 : index
      %64 = vector.load %arg7[%c0_61, %c0_62] : memref<256x16xf32, #tpu.memory_space<vmem>>, vector<256x16xf32>
      %c0_63 = arith.constant 0 : index
      %c0_64 = arith.constant 0 : index
      %65 = vector.load %arg3[%c0_63, %c0_64] : memref<1x16xf32, #tpu.memory_space<vmem>>, vector<1x16xf32>
      %66 = vector.broadcast %65 : vector<1x16xf32> to vector<256x16xf32>
      %67 = arith.addf %64, %66 : vector<256x16xf32>
      %cst_65 = arith.constant 0.000000e+00 : f32
      %68 = vector.broadcast %cst_65 : f32 to vector<256x16xf32>
      %69 = arith.maximumf %67, %68 : vector<256x16xf32>
      %70 = vector.shape_cast %69 : vector<256x16xf32> to vector<16x16x16xf32>
      %c0_66 = arith.constant 0 : index
      %c0_67 = arith.constant 0 : index
      %c0_68 = arith.constant 0 : index
      %c0_69 = arith.constant 0 : index
      %c0_70 = arith.constant 0 : index
      %71 = vector.load %arg6[%c0_66, %c0_67, %c0_68, %c0_69, %c0_70] : memref<1x1x16x16x16xf32, #tpu.memory_space<vmem>>, vector<1x1x16x16x16xf32>
      %72 = vector.shape_cast %71 : vector<1x1x16x16x16xf32> to vector<16x16x16xf32>
      %73 = vector.shape_cast %70 : vector<16x16x16xf32> to vector<1x1x16x16x16xf32>
      tpu.vector_store %arg6[%c0_66, %c0_67, %c0_68, %c0_69, %c0_70], %73 {strides = array<i32>} : memref<1x1x16x16x16xf32, #tpu.memory_space<vmem>>, vector<1x1x16x16x16xf32>,
    } else {
    }
    return
  }
  func.func @transform_0(%arg0: i32, %arg1: i32, %arg2: i32) -> (i32, i32) {
    %c0_i32 = arith.constant 0 : i32
    %c0_i32_0 = arith.constant 0 : i32
    %c0_i32_1 = arith.constant 0 : i32
    return %c0_i32, %c0_i32_0 : i32, i32
  }
  func.func @transform_1(%arg0: i32, %arg1: i32, %arg2: i32) -> (i32, i32, i32, i32, i32) {
    %c0_i32 = arith.constant 0 : i32
    %c0_i32_0 = arith.constant 0 : i32
    %c0_i32_1 = arith.constant 0 : i32
    %c0_i32_2 = arith.constant 0 : i32
    %c0_i32_3 = arith.constant 0 : i32
    return %arg2, %c0_i32, %c0_i32_0, %c0_i32_1, %c0_i32_2 : i32, i32, i32, i32, i32
  }
  func.func @transform_2(%arg0: i32, %arg1: i32, %arg2: i32) -> (i32, i32, i32, i32, i32) {
    %c1_i32 = arith.constant 1 : i32
    %0 = arith.muli %arg1, %c1_i32 : i32
    %1 = arith.addi %0, %arg2 : i32
    %c0_i32 = arith.constant 0 : i32
    %c0_i32_0 = arith.constant 0 : i32
    %c0_i32_1 = arith.constant 0 : i32
    %c0_i32_2 = arith.constant 0 : i32
    return %arg0, %1, %c0_i32, %c0_i32_0, %c0_i32_1 : i32, i32, i32, i32, i32
  }
  func.func @transform_3(%arg0: i32, %arg1: i32, %arg2: i32) -> (i32, i32, i32, i32, i32) {
    %c0_i32 = arith.constant 0 : i32
    %c0_i32_0 = arith.constant 0 : i32
    %c0_i32_1 = arith.constant 0 : i32
    %c0_i32_2 = arith.constant 0 : i32
    return %arg0, %arg1, %c0_i32, %c0_i32_0, %c0_i32_1 : i32, i32, i32, i32, i32
  }
}

</mosaic_0001>

<bundles_post_ra>
// kernel: tpu_custom_call.1
= control target key start
LH: loop header
LB: loop body
LE: loop exit
PB: predicated region body
PF: predicated region fallthrough
CT: control target
= control target key end

     0   :  { %8 = vsyncpa [#allocation4], 0  ;;  %s6445_s0 = inlined_call_operand.vmem [shape: f32[1,16], index: 0, kind: input, shape index: {}]   ;;  %s6446_s1 = inlined_call_operand.vmem [shape: f32[3,3,3,8,16], index: 1, kind: input, shape index: {}]   ;;  %s6447_s2 = inlined_call_operand.vmem [shape: f32[2,10,18,18,8], index: 2, kind: input, shape index: {}]   ;;  %s6448_s3 = inlined_call_operand.hbm [shape: f32[2,8,16,16,16], index: 3, kind: output, shape index: {}]  }
   0x1   :  { %10 = vsyncpa [#allocation4 + $0x1], 0  ;;  %s5007_s12 = smov 0   ;;  %s5009_s13 = smov 0  }
   0x2   :  { %s5011_s14 = smov 0   ;;  %s5013_s15 = smov 0  }
   0x3   :  { %s5015_s16 = smov 0   ;;  %s5017_s17 = smov 0  }
   0x4   :  { %s5019_s18 = smov 0   ;;  %s5021_s19 = smov 0  }
   0x5   :  { %s5023_s20 = smov 0   ;;  %s5025_s21 = smov 0  }
   0x6 LB: > { %6528 = sst [smem:[#allocation6_spill]] %s4973_s19  ;;  %s3428_s22 = sadd.s32 4294967295, %s4981_s21   ;;  %s4981_s21 = sphi %s5025_s21, %s16_s21   ;;  %s4977_s20 = sphi %s5023_s20, %s6642_s20   ;;  %s4973_s19 = sphi %s5021_s19, %s6641_s19   ;;  %s4969_s18 = sphi %s5019_s18, %s6647_s18   ;;  %s4965_s17 = sphi %s5017_s17, %s6639_s17   ;;  %s4961_s16 = sphi %s5015_s16, %s6638_s16   ;;  %s4957_s15 = sphi %s5013_s15, %s6646_s15   ;;  %s4953_s14 = sphi %s5011_s14, %s6645_s14   ;;  %s4949_s13 = sphi %s5009_s13, %s6644_s13   ;;  %s4945_s12 = sphi %s5007_s12, %s6643_s12  }
   0x7   : > { %6529 = sst [smem:[#allocation7_spill]] %s4977_s20  ;;  %s3429_s23 = sadd.s32 4294967294, %s4981_s21  }
   0x8   : > { %s28_s24 = sadd.s32 1, %s4969_s18  ;;  %s31_s25 = sadd.s32 1, %s4973_s19 }
   0x9   : > { %p29_p0 = scmp.ge.s32.totalorder %s28_s24, 3  ;;  %s35_s26 = sadd.s32 1, %s4977_s20 }
   0xa   : > { %p131_p1 = scmp.ne.s32.totalorder %s4953_s14, %s4949_s13  ;;  %p132_p2 = scmp.eq.s32.totalorder %s3428_s22, 47 }
   0xb   : > { %s6649_s24 = smov (%p29_p0, %s28_s24), 0  ;;  %s6651_s25 = smov (!%p29_p0, %s31_s25), %s4973_s19 }
   0xc   : > { %6530 = sst [smem:[#allocation8_spill]] %s6649_s24  ;;  %p137_p3 = scmp.ne.s32.totalorder %s4949_s13, %s4945_s12 }
   0xd   : > { %p33_p4 = scmp.ge.s32.totalorder %s6651_s25, 8  ;;  %p138_p5 = scmp.eq.s32.totalorder %s3429_s23, 47 }
   0xe   : > { %p5069_p6 = por %p132_p2, %p131_p1  ;;  %p3432_p8 = scmp.ge.s32.totalorder %s4981_s21, 1 }
   0xf   : > { %s6653_s25 = smov (%p33_p4, %s6651_s25), 0  ;;  %s6655_s26 = smov (!%p33_p4, %s35_s26), %s4977_s20 }
  0x10   : > { %6532 = sst [smem:[#allocation9_spill]] %s6653_s25  ;;  %p5076_p7 = por %p138_p5, %p137_p3 }
  0x11   : > { %p37_p9 = scmp.ge.s32.totalorder %s6655_s26, 2  ;;  %p181_p10 = scmp.lt.s32.totalorder %s4981_s21, 49 }
  0x12   : > { %s117_s29 = ssub.s32 %s4973_s19, %s6653_s25  ;;  %s121_s5 = sadd.s32 1, %s4953_s14 }
  0x13   : > { %s6657_s26 = smov (%p37_p9, %s6655_s26), 0  ;;  %p182_p11 = pnand %p3432_p8, %p181_p10 }
  0x14   : > { %6534 = sst [smem:[#allocation10_spill]] %s6657_s26  ;;  %s116_s30 = ssub.s32 %s4977_s20, %s6657_s26 }
  0x15   : > { %s118_s4 = sor.u32 %s117_s29, %s116_s30  ;;  %185 = sbr.rel (%p182_p11) target bundleno = 601 (0x259), region = 32 }
  0x16   : > { %p119_p12 = scmp.eq.s32.totalorder %s118_s4, 0 }
  0x18   : > { %s5090_s6 = scalar_select %p119_p12, %s4953_s14, %s121_s5  }
  0x1c   : > { %s6452_s7 = sand.u32 1, %s4949_s13   ;;  %p215_p13 = scmp.lt.s32.totalorder %s4957_s15, 2 }
  0x1d   : > { %s3433_s8 = sshll.u32 %s6452_s7, 8  ;;  %s220_s9 = sadd.s32 %s4957_s15, %s4961_s16 }
  0x1e   : > { %p221_p0 = scmp.lt.s32.totalorder %s4965_s17, 1  ;;  %p223_p1 = scmp.lt.s32.totalorder %s220_s9, 9 }
  0x1f   : > { %s216_s10 = scalar_select %p215_p13, %s4957_s15, 2 }
  0x20   : > { %s222_s11 = scalar_select %p221_p0, %s4965_s17, 1 }
  0x21   : > { %s4778_s22 = smul.u32 72, %s216_s10  ;;  %s6659_s9 = smov (!%p223_p1, %s220_s9), 9 }
  0x22   : > { %s4780_s4 = smul.u32 540, %s222_s11  ;;  %s5111_s19 = scalar_lea.vmem [#allocation3], %s3433_s8 }
  0x23   : > { %s5104_s30 = scalar_lea.vmem %s6446_s1, %s4778_s22  ;;  %s4779_s5 = smul.u32 54, %s6659_s9 }
  0x24   : > { %p3436_p2 = scmp.ne.s32.totalorder %s4957_s15, 0 }
  0x25   : > { %s227_s26 = sadd.s32 %s4780_s4, %s4779_s5  ;;  %vm235_vm0 = vcmask (!%p3436_p2), 130048   ;;  %v4983_v0 = vmov (!%p3436_p2), 0.0  }
  0x26   : > { %s3435_s25 = sshll.u32 %s227_s26, 3  ;;  %234 = sbr.rel (%p3436_p2) target bundleno = 54 (0x36), region = 36  ;;  %236 = vst.msk [vmem:[#allocation2] sm:$0xff] (!%p3436_p2), %vm235_vm0, %v4983_v0  ;;  %237 = vst.msk [vmem:[#allocation2 + $0x8] sm:$0xff] (!%p3436_p2), %vm235_vm0, %v4983_v0 }
  0x27   : > { %s5109_s7 = scalar_lea.vmem %s6447_s2, %s3435_s25  ;;  %238 = vst.msk [vmem:[#allocation2 + $0x10] sm:$0xff] (!%p3436_p2), %vm235_vm0, %v4983_v0  ;;  %239 = vst.msk [vmem:[#allocation2 + $0x18] sm:$0xff] (!%p3436_p2), %vm235_vm0, %v4983_v0 }
  0x28   : > { %240 = vst.msk [vmem:[#allocation2 + $0x20] sm:$0xff] (!%p3436_p2), %vm235_vm0, %v4983_v0  ;;  %241 = vst.msk [vmem:[#allocation2 + $0x28] sm:$0xff] (!%p3436_p2), %vm235_vm0, %v4983_v0 }
  0x29   : > { %242 = vst.msk [vmem:[#allocation2 + $0x30] sm:$0xff] (!%p3436_p2), %vm235_vm0, %v4983_v0  ;;  %243 = vst.msk [vmem:[#allocation2 + $0x38] sm:$0xff] (!%p3436_p2), %vm235_vm0, %v4983_v0 }
  0x2a   : > { %244 = vst.msk [vmem:[#allocation2 + $0x40] sm:$0xff] (!%p3436_p2), %vm235_vm0, %v4983_v0  ;;  %245 = vst.msk [vmem:[#allocation2 + $0x48] sm:$0xff] (!%p3436_p2), %vm235_vm0, %v4983_v0 }
  0x2b   : > { %246 = vst.msk [vmem:[#allocation2 + $0x50] sm:$0xff] (!%p3436_p2), %vm235_vm0, %v4983_v0  ;;  %247 = vst.msk [vmem:[#allocation2 + $0x58] sm:$0xff] (!%p3436_p2), %vm235_vm0, %v4983_v0 }
  0x2c   : > { %248 = vst.msk [vmem:[#allocation2 + $0x60] sm:$0xff] (!%p3436_p2), %vm235_vm0, %v4983_v0  ;;  %249 = vst.msk [vmem:[#allocation2 + $0x68] sm:$0xff] (!%p3436_p2), %vm235_vm0, %v4983_v0 }
  0x2d   : > { %250 = vst.msk [vmem:[#allocation2 + $0x70] sm:$0xff] %vm235_vm0, %v4983_v0  ;;  %251 = vst.msk [vmem:[#allocation2 + $0x78] sm:$0xff] %vm235_vm0, %v4983_v0 }
  0x2e   : > { %252 = vst.msk [vmem:[#allocation2 + $0x80] sm:$0xff] %vm235_vm0, %v4983_v0  ;;  %253 = vst.msk [vmem:[#allocation2 + $0x88] sm:$0xff] %vm235_vm0, %v4983_v0 }
  0x2f   : > { %254 = vst.msk [vmem:[#allocation2 + $0x90] sm:$0xff] %vm235_vm0, %v4983_v0  ;;  %255 = vst.msk [vmem:[#allocation2 + $0x98] sm:$0xff] %vm235_vm0, %v4983_v0 }
  0x30   : > { %256 = vst.msk [vmem:[#allocation2 + $0xa0] sm:$0xff] %vm235_vm0, %v4983_v0  ;;  %257 = vst.msk [vmem:[#allocation2 + $0xa8] sm:$0xff] %vm235_vm0, %v4983_v0 }
  0x31   : > { %258 = vst.msk [vmem:[#allocation2 + $0xb0] sm:$0xff] %vm235_vm0, %v4983_v0  ;;  %259 = vst.msk [vmem:[#allocation2 + $0xb8] sm:$0xff] %vm235_vm0, %v4983_v0 }
  0x32   : > { %260 = vst.msk [vmem:[#allocation2 + $0xc0] sm:$0xff] %vm235_vm0, %v4983_v0  ;;  %261 = vst.msk [vmem:[#allocation2 + $0xc8] sm:$0xff] %vm235_vm0, %v4983_v0 }
  0x33   : > { %262 = vst.msk [vmem:[#allocation2 + $0xd0] sm:$0xff] %vm235_vm0, %v4983_v0  ;;  %263 = vst.msk [vmem:[#allocation2 + $0xd8] sm:$0xff] %vm235_vm0, %v4983_v0 }
  0x34   : > { %264 = vst.msk [vmem:[#allocation2 + $0xe0] sm:$0xff] %vm235_vm0, %v4983_v0  ;;  %265 = vst.msk [vmem:[#allocation2 + $0xe8] sm:$0xff] %vm235_vm0, %v4983_v0 }
  0x35   : > { %266 = vst.msk [vmem:[#allocation2 + $0xf0] sm:$0xff] %vm235_vm0, %v4983_v0  ;;  %267 = vst.msk [vmem:[#allocation2 + $0xf8] sm:$0xff] %vm235_vm0, %v4983_v0 }
  0x36 PF: > { %v354_v1 = vld [vmem:[%s5104_s30] sm:$0xff]  ;;  %vm355_vm1 = vcmask 64512   ;;  %v5151_v3 = vld [vmem:[%s5109_s7 + $0x8] sm:$0xff]  ;;  %v5163_v8 = vld [vmem:[%s5109_s7 + $0x18] sm:$0xff]  ;;  %vm725_vm2 = vcmask 1046528   ;;  %vm1129_vm3 = vcmask 1045504  }
  0x37   : > { %v5148_v2 = vld [vmem:[%s5109_s7] sm:$0xff]  ;;  %4038 = vmatprep.subr.mxu1 %v354_v1  ;;  %v1131_v5 = vrot.slane %v5151_v3, 2  ;;  %v3469_v6 = vld [vmem:[%s5104_s30 + $0x8] sm:$0xff]  ;;  %6536 = vst [vmem:[#allocation12_spill] sm:$0xff] %v5163_v8  ;;  %v731_v11 = vrot.slane %v5163_v8, 1  ;;  %v5178_v15 = vld [vmem:[%s5109_s7 + $0x30] sm:$0xff] }
  0x38   : > { %4040 = vmatprep.mubr.msk.f32.mxu1 %vm355_vm1, %v5148_v2  ;;  %v1130_v4 = vrot.slane %v5148_v2, 2  ;;  %v5159_v7 = vld [vmem:[%s5104_s30 + $0x20] sm:$0xff]  ;;  %4039 = vmatpush3.msra.mxu1 %v354_v1  ;;  %v5169_v10 = vld [vmem:[%s5109_s7 + $0x28] sm:$0x3]  ;;  %v5182_v16 = vld [vmem:[%s5109_s7 + $0x38] sm:$0xff]  ;;  %v736_v17 = vrot.slane %v5178_v15, 1 }
  0x39   : > { %6535 = vst [vmem:[#allocation11_spill] sm:$0xff] %v5159_v7  ;;  %4238 = vmatprep.subr.mxu0 %v5159_v7  ;;  %v5166_v9 = vld [vmem:[%s5109_s7 + $0x20] sm:$0xff]  ;;  %4041 = vmatmul.mubr.msk.f32.vlgmr.msra.gmra.mrb[0].mxu1 %vm355_vm1, %v5151_v3  ;;  %v734_v13 = vrot.slane %v5169_v10, 1  ;;  %v3601_v14 = vld [vmem:[%s5104_s30 + $0x28] sm:$0xff]  ;;  %6538 = vst [vmem:[#allocation14_spill] sm:$0xff] %v5182_v16  ;;  %v737_v23 = vrot.slane %v5182_v16, 1 }
  0x3a   : > { %6537 = vst [vmem:[#allocation13_spill] sm:$0xff] %v5166_v9  ;;  %4088 = vmatprep.subr.mxu1 %v3469_v6  ;;  %v732_v12 = vrot.slane %v5166_v9, 1  ;;  %4239 = vmatpush3.msra.mxu0 %v5159_v7  ;;  %v5186_v18 = vld [vmem:[%s5109_s7 + $0x40] sm:$0x3]  ;;  %v5189_v19 = vld [vmem:[%s5109_s7 + $0x48] sm:$0xff]  ;;  %v5194_v20 = vsel %vm1129_vm3, %v1130_v4, %v1131_v5  ;;  %v5207_v25 = vld [vmem:[%s5109_s7 + $0x50] sm:$0xff] }
  0x3b   : > { %4089 = vmatpush3.msra.mxu1 %v3469_v6  ;;  %4288 = vmatprep.subr.mxu0 %v3601_v14  ;;  %v739_v24 = vrot.slane %v5186_v18, 1  ;;  %v5210_v26 = vld [vmem:[%s5109_s7 + $0x58] sm:$0x3]  ;;  %v741_v27 = vrot.slane %v5189_v19, 1  ;;  %v742_v28 = vrot.slane %v5207_v25, 1  ;;  %v5217_v29 = vld [vmem:[%s5109_s7 + $0x60] sm:$0xff]  ;;  %v5227_v31 = vsel %vm725_vm2, %v736_v17, %v737_v23 }
  0x3c   : > { %v5197_v21 = vsel %vm725_vm2, %v731_v11, %v732_v12  ;;  %v5200_v22 = vsel %vm725_vm2, %v732_v12, %v734_v13  ;;  %4043 = vmatprep.mubr.msk.f32.mxu1 %vm355_vm1, %v5163_v8  ;;  %v5220_v30 = vld [vmem:[%s5109_s7 + $0x68] sm:$0xff]  ;;  %v744_v33 = vrot.slane %v5210_v26, 1  ;;  %v746_v35 = vrot.slane %v5217_v29, 1  ;;  %v5243_v37 = vld [vmem:[%s5109_s7 + $0x70] sm:$0x3]  ;;  %v5246_v38 = vld [vmem:[%s5109_s7 + $0x78] sm:$0xff] }
  0x3d   : > { %4240 = vmatprep.mubr.msk.f32.mxu0 %vm355_vm1, %v5197_v21  ;;  %6539 = vst [vmem:[#allocation15_spill] sm:$0xff] %v5220_v30  ;;  %4044 = vmatmul.mubr.msk.f32.gmra.mrb[2].mxu1 %vm355_vm1, %v5166_v9  ;;  %v5232_v32 = vsel %vm725_vm2, %v737_v23, %v739_v24  ;;  %v5238_v34 = vsel %vm725_vm2, %v741_v27, %v742_v28  ;;  %v747_v36 = vrot.slane %v5220_v30, 1  ;;  %v5249_v39 = vld [vmem:[%s5109_s7 + $0x80] sm:$0xff]  ;;  %v5256_v40 = vld [vmem:[%s5104_s30 + $0x30] sm:$0xff]  ;;  %v749_v42 = vrot.slane %v5243_v37, 1  ;;  %v5279_v48 = vld [vmem:[%s5109_s7 + $0x98] sm:$0xff] }
  0x3e   : > { %4241 = vmatmul.mubr.msk.f32.vlgmr.msra.gmra.mrb[0].mxu0 %vm355_vm1, %v5200_v22  ;;  %4046 = vmatprep.mubr.msk.f32.mxu1 %vm355_vm1, %v5178_v15  ;;  %6540 = vst [vmem:[#allocation16_spill] sm:$0xff] %v5238_v34  ;;  %6541 = vst [vmem:[#allocation17_spill] sm:$0xff] %v5249_v39  ;;  %v5261_v41 = vsel %vm725_vm2, %v742_v28, %v744_v33  ;;  %v751_v44 = vrot.slane %v5246_v38, 1  ;;  %v752_v45 = vrot.slane %v5249_v39, 1  ;;  %v5272_v46 = vld [vmem:[%s5109_s7 + $0x88] sm:$0x3] }
  0x3f   : > { %4289 = vmatpush3.msra.mxu0 %v3601_v14  ;;  %4243 = vmatprep.mubr.msk.f32.mxu0 %vm355_vm1, %v5227_v31  ;;  %6542 = vst [vmem:[#allocation18_spill] sm:$0xff] %v5261_v41  ;;  %v5267_v43 = vsel %vm725_vm2, %v746_v35, %v747_v36  ;;  %v5276_v47 = vld [vmem:[%s5109_s7 + $0x90] sm:$0xff]  ;;  %v5288_v49 = vsel %vm725_vm2, %v747_v36, %v749_v42  ;;  %v754_v50 = vrot.slane %v5272_v46, 1  ;;  %v757_v54 = vrot.slane %v5279_v48, 1  ;;  %v5302_v55 = vld [vmem:[%s5109_s7 + $0xa0] sm:$0x3] }
  0x40   : > { %6543 = vst [vmem:[#allocation19_spill] sm:$0xff] %v5267_v43  ;;  %4338 = vmatprep.subr.mxu0 %v5256_v40  ;;  %6544 = vst [vmem:[#allocation20_spill] sm:$0xff] %v5288_v49  ;;  %v5294_v51 = vld [vmem:[%s5104_s30 + $0x10] sm:$0xff]  ;;  %v5297_v52 = vsel %vm725_vm2, %v751_v44, %v752_v45  ;;  %v756_v53 = vrot.slane %v5276_v47, 1  ;;  %v5306_v56 = vld [vmem:[%s5109_s7 + $0xa8] sm:$0xff]  ;;  %v759_v59 = vrot.slane %v5302_v55, 1 }
  0x41   : > { %4047 = vmatmul.mubr.msk.f32.gmra.mrb[4].mxu1 %vm355_vm1, %v5182_v16  ;;  %6545 = vst [vmem:[#allocation21_spill] sm:$0xff] %v5297_v52  ;;  %4138 = vmatprep.subr.mxu1 %v5294_v51  ;;  %v5309_v57 = vld [vmem:[%s5109_s7 + $0xb0] sm:$0xff]  ;;  %v5318_v58 = vsel %vm725_vm2, %v752_v45, %v754_v50  ;;  %v761_v61 = vrot.slane %v5306_v56, 1  ;;  %v5329_v63 = vld [vmem:[%s5109_s7 + $0xb8] sm:$0x3]  ;;  %v5332_v0 = vld [vmem:[%s5109_s7 + $0xc0] sm:$0xff] }
  0x42   : > { %4244 = vmatmul.mubr.msk.f32.gmra.mrb[2].mxu0 %vm355_vm1, %v5232_v32  ;;  %4049 = vmatprep.mubr.msk.f32.mxu1 %vm355_vm1, %v5189_v19  ;;  %v5324_v60 = vsel %vm725_vm2, %v756_v53, %v757_v54  ;;  %v762_v62 = vrot.slane %v5309_v57, 1  ;;  %v5335_v1 = vld [vmem:[%s5109_s7 + $0xc8] sm:$0xff]  ;;  %v5344_v4 = vsel %vm725_vm2, %v757_v54, %v759_v59  ;;  %v764_v6 = vrot.slane %v5329_v63, 1  ;;  %v5355_v14 = vld [vmem:[%s5109_s7 + $0xd0] sm:$0x3]  ;;  %v5390_v42 = vld [vmem:[%s5109_s7 + $0xd8] sm:$0xff] }
  0x43   : > { %4246 = vmatprep.mubr.msk.f32.mxu0 %vm355_vm1, %v5238_v34  ;;  %v766_v12 = vrot.slane %v5332_v0, 1  ;;  %v767_v13 = vrot.slane %v5335_v1, 1  ;;  %v769_v23 = vrot.slane %v5355_v14, 1  ;;  %v1135_v27 = vrot.slane %v5163_v8, 2  ;;  %v5406_v50 = vld [vmem:[%s5109_s7 + $0xe0] sm:$0xff]  ;;  %p3733_p3 = scmp.ne.s32.totalorder %s4957_s15, 2 }
  0x44   : > { %v5350_v11 = vsel %vm725_vm2, %v761_v61, %v762_v62  ;;  %v5364_v17 = vsel %vm725_vm2, %v762_v62, %v764_v6  ;;  %v1136_v28 = vrot.slane %v5166_v9, 2  ;;  %v1138_v33 = vrot.slane %v5169_v10, 2  ;;  %v5415_v62 = vld [vmem:[%s5109_s7 + $0xf0] sm:$0xff]  ;;  %v5418_v6 = vld [vmem:[%s5104_s30 + $0x38] sm:$0xff]  ;;  %v5473_v8 = vld [vmem:[%s5109_s7 + $0x120] sm:$0xff] }
  0x45   : > { %4050 = vmatmul.mubr.msk.f32.gmra.mrb[6].mxu1 %vm355_vm1, %v5207_v25  ;;  %v5370_v24 = vsel %vm725_vm2, %v766_v12, %v767_v13  ;;  %v5382_v35 = vsel %vm725_vm2, %v767_v13, %v769_v23  ;;  %v1140_v44 = vrot.slane %v5178_v15, 2  ;;  %v1141_v10 = vrot.slane %v5182_v16, 2  ;;  %v5431_v12 = vld [vmem:[%s5109_s7 + $0xf8] sm:$0xff]  ;;  %v5435_v23 = vld [vmem:[%s5109_s7 + $0x10] sm:$0x3] }
  0x46   : > { %4247 = vmatmul.mubr.msk.f32.gmra.mrb[4].mxu0 %vm355_vm1, %v5261_v41  ;;  %4052 = vmatprep.mubr.msk.f32.mxu1 %vm355_vm1, %v5217_v29  ;;  %v5387_v36 = vsel %vm1129_vm3, %v1135_v27, %v1136_v28  ;;  %v5401_v45 = vsel %vm1129_vm3, %v1136_v28, %v1138_v33  ;;  %v1143_v53 = vrot.slane %v5186_v18, 2  ;;  %v1145_v59 = vrot.slane %v5189_v19, 2 }
  0x47   : > { %4249 = vmatprep.mubr.msk.f32.mxu0 %vm355_vm1, %v5267_v43  ;;  %6546 = vst [vmem:[#allocation22_spill] sm:$0xff] %v5387_v36  ;;  %6547 = vst [vmem:[#allocation23_spill] sm:$0xff] %v5401_v45  ;;  %v5410_v54 = vsel %vm1129_vm3, %v1140_v44, %v1141_v10  ;;  %v1146_v61 = vrot.slane %v5207_v25, 2  ;;  %v1148_v13 = vrot.slane %v5210_v26, 2  ;;  %v1150_v28 = vrot.slane %v5217_v29, 2 }
  0x48   : > { %6548 = vst [vmem:[#allocation24_spill] sm:$0xff] %v5410_v54  ;;  %v5428_v18 = vsel %vm1129_vm3, %v1141_v10, %v1143_v53  ;;  %v1151_v33 = vrot.slane %v5220_v30, 2  ;;  %v1133_v44 = vrot.slane %v5435_v23, 2  ;;  %v5466_v53 = vld [vmem:[%s5109_s7 + $0x110] sm:$0xff]  ;;  %v1181_v7 = vrot.slane %v5431_v12, 2 }
  0x49   : > { %4053 = vmatmul.mubr.msk.f32.gmra.mrb[8].mxu1 %vm355_vm1, %v5220_v30  ;;  %6549 = vst [vmem:[#allocation25_spill] sm:$0xff] %v5428_v18  ;;  %v5440_v27 = vsel %vm1129_vm3, %v1145_v59, %v1146_v61  ;;  %v5461_v10 = vsel %vm1129_vm3, %v1146_v61, %v1148_v13  ;;  %v1153_v59 = vrot.slane %v5243_v37, 2  ;;  %v5489_v61 = vld [vmem:[%s5109_s7 + $0x128] sm:$0xff]  ;;  %v1158_v13 = vrot.slane %v5272_v46, 2 }
  0x4a   : > { %4250 = vmatmul.mubr.msk.f32.gmra.mrb[6].mxu0 %vm355_vm1, %v5288_v49  ;;  %4055 = vmatprep.mubr.msk.f32.mxu1 %vm355_vm1, %v5246_v38  ;;  %6550 = vst [vmem:[#allocation26_spill] sm:$0xff] %v5440_v27  ;;  %v5456_v26 = vsel %vm1129_vm3, %v1131_v5, %v1133_v44  ;;  %6551 = vst [vmem:[#allocation27_spill] sm:$0xff] %v5461_v10  ;;  %v5470_v9 = vsel %vm1129_vm3, %v1150_v28, %v1151_v33  ;;  %v1155_v5 = vrot.slane %v5246_v38, 2  ;;  %vm3137_vm4 = vcmask 130048  }
  0x4b   : > { %4252 = vmatprep.mubr.msk.f32.mxu0 %vm355_vm1, %v5297_v52  ;;  %6552 = vst [vmem:[#allocation28_spill] sm:$0xff] %v5470_v9  ;;  %v1156_v44 = vrot.slane %v5249_v39, 2  ;;  %v5484_v37 = vsel %vm1129_vm3, %v1151_v33, %v1153_v59  ;;  %v5512_v33 = vld [vmem:[%s5109_s7 + $0x140] sm:$0xff]  ;;  %v1163_v59 = vrot.slane %v5302_v55, 2 }
  0x4c   : > { %6553 = vst [vmem:[#allocation29_spill] sm:$0xff] %v5484_v37  ;;  %6557 = vst [vmem:[#allocation33_spill] sm:$0xff] %v5512_v33 }
  0x4d   : > { %4056 = vmatmul.mubr.msk.f32.gmra.mrb[10].mxu1 %vm355_vm1, %v5249_v39  ;;  %v5493_v28 = vsel %vm1129_vm3, %v1155_v5, %v1156_v44  ;;  %v5507_v46 = vsel %vm1129_vm3, %v1156_v44, %v1158_v13  ;;  %v726_v44 = vrot.slane %v5148_v2, 1  ;;  %v1168_v13 = vrot.slane %v5329_v63, 2  ;;  %v5544_v2 = vld [vmem:[%s5109_s7 + $0x168] sm:$0xff]  ;;  %v5560_v63 = vld [vmem:[%s5109_s7 + $0x170] sm:$0xff] }
  0x4e   : > { %4253 = vmatmul.mubr.msk.f32.gmra.mrb[8].mxu0 %vm355_vm1, %v5318_v58  ;;  %4058 = vmatprep.mubr.msk.f32.mxu1 %vm355_vm1, %v5276_v47  ;;  %6554 = vst [vmem:[#allocation30_spill] sm:$0xff] %v5493_v28  ;;  %6556 = vst [vmem:[#allocation32_spill] sm:$0xff] %v5507_v46 }
  0x4f   : > { %4255 = vmatprep.mubr.msk.f32.mxu0 %vm355_vm1, %v5324_v60  ;;  %6563 = vst [vmem:[#allocation39_spill] sm:$0xff] %v5544_v2  ;;  %6565 = vst [vmem:[#allocation41_spill] sm:$0xff] %v5560_v63 }
  0x51   : > { %4059 = vmatmul.mubr.msk.f32.gmra.mrb[12].mxu1 %vm355_vm1, %v5279_v48 }
  0x52   : > { %4256 = vmatmul.mubr.msk.f32.gmra.mrb[10].mxu0 %vm355_vm1, %v5344_v4  ;;  %4061 = vmatprep.mubr.msk.f32.mxu1 %vm355_vm1, %v5306_v56 }
  0x53   : > { %4258 = vmatprep.mubr.msk.f32.mxu0 %vm355_vm1, %v5350_v11 }
  0x55   : > { %4062 = vmatmul.mubr.msk.f32.gmra.mrb[14].mxu1 %vm355_vm1, %v5309_v57 }
  0x56   : > { %4259 = vmatmul.mubr.msk.f32.gmra.mrb[12].mxu0 %vm355_vm1, %v5364_v17  ;;  %4064 = vmatprep.mubr.msk.f32.mxu1 %vm355_vm1, %v5332_v0 }
  0x57   : > { %4261 = vmatprep.mubr.msk.f32.mxu0 %vm355_vm1, %v5370_v24 }
  0x59   : > { %4065 = vmatmul.mubr.msk.f32.gmra.mrb[16].mxu1 %vm355_vm1, %v5335_v1 }
  0x5a   : > { %4262 = vmatmul.mubr.msk.f32.gmra.mrb[14].mxu0 %vm355_vm1, %v5382_v35  ;;  %4067 = vmatprep.mubr.msk.f32.mxu1 %vm355_vm1, %v5390_v42 }
  0x5b   : > { %4290 = vmatprep.mubr.msk.f32.mxu0 %vm355_vm1, %v5387_v36  ;;  %v5591_v36 = vld [vmem:[%s5109_s7 + $0x100] sm:$0x3] }
  0x5d   : > { %4068 = vmatmul.mubr.msk.f32.gmra.mrb[18].mxu1 %vm355_vm1, %v5406_v50 }
  0x5e   : > { %4291 = vmatmul.mubr.msk.f32.vlgmr.msra.gmra.mrb[0].mxu0 %vm355_vm1, %v5401_v45  ;;  %4070 = vmatprep.mubr.msk.f32.mxu1 %vm355_vm1, %v5415_v62 }
  0x5f   : > { %4339 = vmatpush3.msra.mxu0 %v5256_v40  ;;  %4293 = vmatprep.mubr.msk.f32.mxu0 %vm355_vm1, %v5410_v54  ;;  %v5443_v40 = vld [vmem:[%s5109_s7 + $0x108] sm:$0xff] }
  0x60   : > { %4388 = vmatprep.subr.mxu0 %v5418_v6 }
  0x61   : > { %4071 = vmatmul.mubr.msk.f32.gmra.mrb[20].mxu1 %vm355_vm1, %v5431_v12 }
  0x62   : > { %4294 = vmatmul.mubr.msk.f32.gmra.mrb[2].mxu0 %vm355_vm1, %v5428_v18  ;;  %4073 = vmatprep.mubr.msk.f32.mxu1 %vm355_vm1, %v5443_v40  ;;  %v1165_v18 = vrot.slane %v5306_v56, 2 }
  0x63   : > { %4296 = vmatprep.mubr.msk.f32.mxu0 %vm355_vm1, %v5440_v27  ;;  %v1160_v27 = vrot.slane %v5276_v47, 2 }
  0x65   : > { %4074 = vmatmul.mubr.msk.f32.gmra.mrb[22].mxu1 %vm355_vm1, %v5466_v53 }
  0x66   : > { %4297 = vmatmul.mubr.msk.f32.gmra.mrb[4].mxu0 %vm355_vm1, %v5461_v10  ;;  %4076 = vmatprep.mubr.msk.f32.mxu1 %vm355_vm1, %v5473_v8  ;;  %v5496_v10 = vld [vmem:[%s5109_s7 + $0x138] sm:$0xff] }
  0x67   : > { %4299 = vmatprep.mubr.msk.f32.mxu0 %vm355_vm1, %v5470_v9  ;;  %6555 = vst [vmem:[#allocation31_spill] sm:$0xff] %v5496_v10  ;;  %v1161_v9 = vrot.slane %v5279_v48, 2 }
  0x69   : > { %4077 = vmatmul.mubr.msk.f32.gmra.mrb[24].mxu1 %vm355_vm1, %v5489_v61  ;;  %v5516_v5 = vsel %vm1129_vm3, %v1160_v27, %v1161_v9  ;;  %v5531_v55 = vsel %vm1129_vm3, %v1161_v9, %v1163_v59  ;;  %v5536_v27 = vld [vmem:[%s5109_s7 + $0x158] sm:$0xff]  ;;  %v1171_v9 = vrot.slane %v5335_v1, 2  ;;  %v729_v59 = vrot.slane %v5435_v23, 1 }
  0x6a   : > { %4300 = vmatmul.mubr.msk.f32.gmra.mrb[6].mxu0 %vm355_vm1, %v5484_v37  ;;  %4079 = vmatprep.mubr.msk.f32.mxu1 %vm355_vm1, %v5496_v10  ;;  %6558 = vst [vmem:[#allocation34_spill] sm:$0xff] %v5516_v5  ;;  %v5519_v37 = vld [vmem:[%s5109_s7 + $0x150] sm:$0xff]  ;;  %6560 = vst [vmem:[#allocation36_spill] sm:$0xff] %v5531_v55 }
  0x6b   : > { %4302 = vmatprep.mubr.msk.f32.mxu0 %vm355_vm1, %v5493_v28  ;;  %6559 = vst [vmem:[#allocation35_spill] sm:$0xff] %v5519_v37  ;;  %v1166_v28 = vrot.slane %v5309_v57, 2  ;;  %6561 = vst [vmem:[#allocation37_spill] sm:$0xff] %v5536_v27 }
  0x6d   : > { %4080 = vmatmul.mubr.msk.f32.gmra.mrb[26].mxu1 %vm355_vm1, %v5512_v33  ;;  %v5541_v54 = vsel %vm1129_vm3, %v1165_v18, %v1166_v28  ;;  %v1173_v18 = vrot.slane %v5355_v14, 2 }
  0x6e   : > { %4303 = vmatmul.mubr.msk.f32.gmra.mrb[8].mxu0 %vm355_vm1, %v5507_v46  ;;  %4082 = vmatprep.mubr.msk.f32.mxu1 %vm355_vm1, %v5519_v37  ;;  %v727_v46 = vrot.slane %v5151_v3, 1  ;;  %6562 = vst [vmem:[#allocation38_spill] sm:$0xff] %v5541_v54  ;;  %v5555_v3 = vsel %vm1129_vm3, %v1166_v28, %v1168_v13  ;;  %v1176_v28 = vrot.slane %v5406_v50, 2  ;;  %v5571_v13 = vld [vmem:[%s5109_s7 + $0xe8] sm:$0x3] }
  0x6f   : > { %4305 = vmatprep.mubr.msk.f32.mxu0 %vm355_vm1, %v5516_v5  ;;  %v1170_v5 = vrot.slane %v5332_v0, 2  ;;  %6564 = vst [vmem:[#allocation40_spill] sm:$0xff] %v5555_v3  ;;  %v5580_v14 = vsel %vm1129_vm3, %v1171_v9, %v1173_v18  ;;  %v1186_v18 = vrot.slane %v5466_v53, 2 }
  0x70   : > { %v728_v45 = vsel %vm725_vm2, %v726_v44, %v727_v46  ;;  %6567 = vst [vmem:[#allocation43_spill] sm:$0xff] %v5580_v14  ;;  %v730_v23 = vsel %vm725_vm2, %v727_v46, %v729_v59 }
  0x71   : > { %4083 = vmatmul.mubr.msk.f32.gmra.mrb[28].mxu1 %vm355_vm1, %v5536_v27 }
  0x72   : > { %4306 = vmatmul.mubr.msk.f32.gmra.mrb[10].mxu0 %vm355_vm1, %v5531_v55  ;;  %4085 = vmatprep.mubr.msk.f32.mxu1 %vm355_vm1, %v5544_v2  ;;  %v5565_v55 = vsel %vm1129_vm3, %v1170_v5, %v1171_v9  ;;  %v1178_v5 = vrot.slane %v5571_v13, 2  ;;  %v1185_v9 = vrot.slane %v5443_v40, 2 }
  0x73   : > { %4308 = vmatprep.mubr.msk.f32.mxu0 %vm355_vm1, %v5541_v54  ;;  %6566 = vst [vmem:[#allocation42_spill] sm:$0xff] %v5565_v55  ;;  %v1175_v54 = vrot.slane %v5390_v42, 2 }
  0x74   : > { %v5630_v59 = vsel %vm1129_vm3, %v1185_v9, %v1186_v18  ;;  %v1195_v9 = vrot.slane %v5496_v10, 2 }
  0x75   : > { %4086 = vmatmul.mubr.msk.f32.gmra.mrb[30].mxu1 %vm355_vm1, %v5560_v63  ;;  %v5586_v44 = vsel %vm1129_vm3, %v1175_v54, %v1176_v28  ;;  %v1183_v54 = vrot.slane %v5591_v36, 2  ;;  %6572 = vst [vmem:[#allocation48_spill] sm:$0xff] %v5630_v59 }
  0x76   : > { %4309 = vmatmul.mubr.msk.f32.gmra.mrb[12].mxu0 %vm355_vm1, %v5555_v3  ;;  %4090 = vmatprep.mubr.msk.f32.mxu1 %vm355_vm1, %v728_v45  ;;  %6568 = vst [vmem:[#allocation44_spill] sm:$0xff] %v5586_v44  ;;  %v1180_v3 = vrot.slane %v5415_v62, 2  ;;  %v5603_v45 = vsel %vm1129_vm3, %v1176_v28, %v1178_v5  ;;  %v1190_v28 = vrot.slane %v5473_v8, 2 }
  0x77   : > { %4311 = vmatprep.mubr.msk.f32.mxu0 %vm355_vm1, %v5565_v55  ;;  %v5594_v55 = vld [vmem:[%s5104_s30 + $0x18] sm:$0xff]  ;;  %6569 = vst [vmem:[#allocation45_spill] sm:$0xff] %v5603_v45 }
  0x78   : > { %v5609_v46 = vsel %vm1129_vm3, %v1180_v3, %v1181_v7 }
  0x79   : > { %4091 = vmatmul.mubr.msk.f32.vlgmr.msra.gmra.mrb[0].mxu1 %vm355_vm1, %v730_v23  ;;  %6570 = vst [vmem:[#allocation46_spill] sm:$0xff] %v5609_v46  ;;  %v1191_v23 = vrot.slane %v5489_v61, 2 }
  0x7a   : > { %4312 = vmatmul.mubr.msk.f32.gmra.mrb[14].mxu0 %vm355_vm1, %v5580_v14  ;;  %4139 = vmatpush3.msra.mxu1 %v5294_v51  ;;  %v5614_v51 = vld [vmem:[%s5109_s7 + $0x118] sm:$0x3] }
  0x7b   : > { %4314 = vmatprep.mubr.msk.f32.mxu0 %vm355_vm1, %v5586_v44  ;;  %4093 = vmatprep.mubr.msk.f32.mxu1 %vm355_vm1, %v5197_v21  ;;  %v5624_v21 = vsel %vm1129_vm3, %v1181_v7, %v1183_v54  ;;  %v1188_v3 = vrot.slane %v5614_v51, 2  ;;  %v5650_v54 = vsel %vm1129_vm3, %v1190_v28, %v1191_v23 }
  0x7c   : > { %4188 = vmatprep.subr.mxu1 %v5594_v55  ;;  %6571 = vst [vmem:[#allocation47_spill] sm:$0xff] %v5624_v21  ;;  %6574 = vst [vmem:[#allocation50_spill] sm:$0xff] %v5650_v54 }
  0x7d   : > { %4094 = vmatmul.mubr.msk.f32.gmra.mrb[2].mxu1 %vm355_vm1, %v5200_v22  ;;  %v5635_v22 = vld [vmem:[%s5109_s7 + $0x130] sm:$0x3]  ;;  %v5644_v7 = vsel %vm1129_vm3, %v1186_v18, %v1188_v3 }
  0x7e   : > { %4315 = vmatmul.mubr.msk.f32.gmra.mrb[16].mxu0 %vm355_vm1, %v5603_v45  ;;  %4096 = vmatprep.mubr.msk.f32.mxu1 %vm355_vm1, %v5227_v31  ;;  %6573 = vst [vmem:[#allocation49_spill] sm:$0xff] %v5644_v7  ;;  %v1193_v5 = vrot.slane %v5635_v22, 2 }
  0x7f   : > { %4317 = vmatprep.mubr.msk.f32.mxu0 %vm355_vm1, %v5609_v46  ;;  %v5655_v46 = vld [vmem:[%s5109_s7 + $0x148] sm:$0x3] }
  0x80   : > { %v5664_v18 = vsel %vm1129_vm3, %v1191_v23, %v1193_v5  ;;  %v1198_v3 = vrot.slane %v5655_v46, 2 }
  0x81   : > { %4097 = vmatmul.mubr.msk.f32.gmra.mrb[4].mxu1 %vm355_vm1, %v5232_v32  ;;  %6575 = vst [vmem:[#allocation51_spill] sm:$0xff] %v5664_v18 }
  0x82   : > { %4318 = vmatmul.mubr.msk.f32.gmra.mrb[18].mxu0 %vm355_vm1, %v5624_v21  ;;  %4099 = vmatprep.mubr.msk.f32.mxu1 %vm355_vm1, %v5238_v34  ;;  %v1196_v21 = vrot.slane %v5512_v33, 2  ;;  %v5721_v34 = vld [vmem:[%s5109_s7 + $0x190] sm:$0x3] }
  0x83   : > { %4320 = vmatprep.mubr.msk.f32.mxu0 %vm355_vm1, %v5630_v59  ;;  %v1201_v59 = vrot.slane %v5536_v27, 2  ;;  %6580 = vst [vmem:[#allocation56_spill] sm:$0xff] %v5721_v34 }
  0x84   : > { %v5670_v28 = vsel %vm1129_vm3, %v1195_v9, %v1196_v21  ;;  %v5684_v23 = vsel %vm1129_vm3, %v1196_v21, %v1198_v3 }
  0x85   : > { %4100 = vmatmul.mubr.msk.f32.gmra.mrb[6].mxu1 %vm355_vm1, %v5261_v41  ;;  %6576 = vst [vmem:[#allocation52_spill] sm:$0xff] %v5670_v28  ;;  %v5675_v41 = vld [vmem:[%s5109_s7 + $0x160] sm:$0x3]  ;;  %6577 = vst [vmem:[#allocation53_spill] sm:$0xff] %v5684_v23 }
  0x86   : > { %4321 = vmatmul.mubr.msk.f32.gmra.mrb[20].mxu0 %vm355_vm1, %v5644_v7  ;;  %4102 = vmatprep.mubr.msk.f32.mxu1 %vm355_vm1, %v5267_v43  ;;  %v1200_v7 = vrot.slane %v5519_v37, 2  ;;  %v1203_v5 = vrot.slane %v5675_v41, 2  ;;  %v5698_v43 = vld [vmem:[%s5109_s7 + $0x180] sm:$0xff] }
  0x87   : > { %4323 = vmatprep.mubr.msk.f32.mxu0 %vm355_vm1, %v5650_v54  ;;  %v1206_v54 = vrot.slane %v5560_v63, 2 }
  0x88   : > { %v5690_v9 = vsel %vm1129_vm3, %v1200_v7, %v1201_v59  ;;  %v5710_v21 = vsel %vm1129_vm3, %v1201_v59, %v1203_v5 }
  0x89   : > { %4103 = vmatmul.mubr.msk.f32.gmra.mrb[8].mxu1 %vm355_vm1, %v5288_v49  ;;  %6578 = vst [vmem:[#allocation54_spill] sm:$0xff] %v5690_v9  ;;  %v5695_v49 = vld [vmem:[%s5109_s7 + $0x178] sm:$0x3]  ;;  %6579 = vst [vmem:[#allocation55_spill] sm:$0xff] %v5710_v21 }
  0x8a   : > { %4324 = vmatmul.mubr.msk.f32.gmra.mrb[22].mxu0 %vm355_vm1, %v5664_v18  ;;  %4105 = vmatprep.mubr.msk.f32.mxu1 %vm355_vm1, %v5297_v52  ;;  %v1205_v18 = vrot.slane %v5544_v2, 2  ;;  %v1208_v7 = vrot.slane %v5695_v49, 2  ;;  %v2067_v52 = vrot.slane %v5698_v43, 2 }
  0x8b   : > { %4326 = vmatprep.mubr.msk.f32.mxu0 %vm355_vm1, %v5670_v28  ;;  %v5701_v28 = vld [vmem:[%s5109_s7 + $0x188] sm:$0xff] }
  0x8c   : > { %v5716_v3 = vsel %vm1129_vm3, %v1205_v18, %v1206_v54  ;;  %v5730_v59 = vsel %vm1129_vm3, %v1206_v54, %v1208_v7  ;;  %v2070_v18 = vrot.slane %v5721_v34, 2  ;;  %v776_v34 = vrot.slane %v5415_v62, 1 }
  0x8d   : > { %4106 = vmatmul.mubr.msk.f32.gmra.mrb[10].mxu1 %vm355_vm1, %v5318_v58  ;;  %6581 = vst [vmem:[#allocation57_spill] sm:$0xff] %v5730_v59 }
  0x8e   : > { %4327 = vmatmul.mubr.msk.f32.gmra.mrb[24].mxu0 %vm355_vm1, %v5684_v23  ;;  %4108 = vmatprep.mubr.msk.f32.mxu1 %vm355_vm1, %v5324_v60  ;;  %v2068_v23 = vrot.slane %v5701_v28, 2 }
  0x8f   : > { %4329 = vmatprep.mubr.msk.f32.mxu0 %vm355_vm1, %v5690_v9  ;;  %v771_v9 = vrot.slane %v5390_v42, 1 }
  0x90   : > { %v5736_v5 = vsel %vm1129_vm3, %v2067_v52, %v2068_v23  ;;  %v5747_v54 = vsel %vm1129_vm3, %v2068_v23, %v2070_v18  ;;  %v774_v52 = vrot.slane %v5571_v13, 1  ;;  %v779_v23 = vrot.slane %v5591_v36, 1 }
  0x91   : > { %4109 = vmatmul.mubr.msk.f32.gmra.mrb[12].mxu1 %vm355_vm1, %v5344_v4  ;;  %6582 = vst [vmem:[#allocation58_spill] sm:$0xff] %v5736_v5  ;;  %6583 = vst [vmem:[#allocation59_spill] sm:$0xff] %v5747_v54  ;;  %v782_v18 = vrot.slane %v5466_v53, 1 }
  0x92   : > { %4330 = vmatmul.mubr.msk.f32.gmra.mrb[26].mxu0 %vm355_vm1, %v5710_v21  ;;  %4111 = vmatprep.mubr.msk.f32.mxu1 %vm355_vm1, %v5350_v11  ;;  %v772_v21 = vrot.slane %v5406_v50, 1 }
  0x93   : > { %4332 = vmatprep.mubr.msk.f32.mxu0 %vm355_vm1, %v5716_v3 }
  0x94   : > { %v5753_v7 = vsel %vm725_vm2, %v771_v9, %v772_v21  ;;  %v5766_v13 = vsel %vm725_vm2, %v772_v21, %v774_v52  ;;  %v781_v9 = vrot.slane %v5443_v40, 1  ;;  %v784_v21 = vrot.slane %v5614_v51, 1 }
  0x95   : > { %4112 = vmatmul.mubr.msk.f32.gmra.mrb[14].mxu1 %vm355_vm1, %v5364_v17  ;;  %v786_v52 = vrot.slane %v5473_v8, 1  ;;  %v789_v51 = vrot.slane %v5635_v22, 1 }
  0x96   : > { %4333 = vmatmul.mubr.msk.f32.gmra.mrb[28].mxu0 %vm355_vm1, %v5730_v59  ;;  %4114 = vmatprep.mubr.msk.f32.mxu1 %vm355_vm1, %v5370_v24  ;;  %v777_v59 = vrot.slane %v5431_v12, 1 }
  0x97   : > { %4335 = vmatprep.mubr.msk.f32.mxu0 %vm355_vm1, %v5736_v5  ;;  %v5775_v5 = vld [vmem:[%s5104_s30 + $0x40] sm:$0xff] }
  0x98   : > { %v5785_v36 = vsel %vm725_vm2, %v777_v59, %v779_v23  ;;  %v791_v23 = vrot.slane %v5496_v10, 1 }
  0x99   : > { %4115 = vmatmul.mubr.msk.f32.gmra.mrb[16].mxu1 %vm355_vm1, %v5382_v35 }
  0x9a   : > { %4336 = vmatmul.mubr.msk.f32.gmra.mrb[30].mxu0 %vm355_vm1, %v5747_v54  ;;  %4117 = vmatprep.mubr.msk.f32.mxu1 %vm355_vm1, %v5753_v7  ;;  %v5772_v54 = vsel %vm725_vm2, %v776_v34, %v777_v59  ;;  %v5791_v34 = vsel %vm725_vm2, %v781_v9, %v782_v18  ;;  %v792_v9 = vrot.slane %v5512_v33, 1 }
  0x9b   : > { %4340 = vmatprep.mubr.msk.f32.mxu0 %vm355_vm1, %v5178_v15 }
  0x9d   : > { %4118 = vmatmul.mubr.msk.f32.gmra.mrb[18].mxu1 %vm355_vm1, %v5766_v13 }
  0x9e   : > { %4341 = vmatmul.mubr.msk.f32.vlgmr.msra.gmra.mrb[0].mxu0 %vm355_vm1, %v5182_v16  ;;  %4120 = vmatprep.mubr.msk.f32.mxu1 %vm355_vm1, %v5772_v54  ;;  %v787_v16 = vrot.slane %v5489_v61, 1 }
  0x9f   : > { %4389 = vmatpush3.msra.mxu0 %v5418_v6  ;;  %4343 = vmatprep.mubr.msk.f32.mxu0 %vm355_vm1, %v5189_v19  ;;  %v5805_v6 = vsel %vm725_vm2, %v782_v18, %v784_v21  ;;  %v794_v18 = vrot.slane %v5655_v46, 1  ;;  %v5826_v21 = vsel %vm725_vm2, %v791_v23, %v792_v9  ;;  %v799_v46 = vrot.slane %v5675_v41, 1 }
  0xa0   : > { %4438 = vmatprep.subr.mxu0 %v5775_v5  ;;  %v5809_v59 = vsel %vm725_vm2, %v786_v52, %v787_v16  ;;  %v5822_v22 = vsel %vm725_vm2, %v787_v16, %v789_v51  ;;  %v796_v52 = vrot.slane %v5519_v37, 1  ;;  %v801_v23 = vrot.slane %v5544_v2, 1 }
  0xa1   : > { %4121 = vmatmul.mubr.msk.f32.gmra.mrb[20].mxu1 %vm355_vm1, %v5785_v36  ;;  %v5839_v16 = vsel %vm725_vm2, %v792_v9, %v794_v18  ;;  %v804_v9 = vrot.slane %v5695_v49, 1  ;;  %v6585_v49 = vld [vmem:[#allocation11_spill] sm:$0xff] }
  0xa2   : > { %4344 = vmatmul.mubr.msk.f32.gmra.mrb[2].mxu0 %vm355_vm1, %v5207_v25  ;;  %4123 = vmatprep.mubr.msk.f32.mxu1 %vm355_vm1, %v5791_v34 }
  0xa3   : > { %4346 = vmatprep.mubr.msk.f32.mxu0 %vm355_vm1, %v5217_v29 }
  0xa5   : > { %4124 = vmatmul.mubr.msk.f32.gmra.mrb[22].mxu1 %vm355_vm1, %v5805_v6 }
  0xa6   : > { %4347 = vmatmul.mubr.msk.f32.gmra.mrb[4].mxu0 %vm355_vm1, %v5220_v30  ;;  %4126 = vmatprep.mubr.msk.f32.mxu1 %vm355_vm1, %v5809_v59  ;;  %v797_v30 = vrot.slane %v5536_v27, 1 }
  0xa7   : > { %4349 = vmatprep.mubr.msk.f32.mxu0 %vm355_vm1, %v5246_v38 }
  0xa8   : > { %v5843_v51 = vsel %vm725_vm2, %v796_v52, %v797_v30  ;;  %v5856_v41 = vsel %vm725_vm2, %v797_v30, %v799_v46  ;;  %v6589_v52 = vld [vmem:[#allocation26_spill] sm:$0xff]  ;;  %v6590_v46 = vld [vmem:[#allocation27_spill] sm:$0xff] }
  0xa9   : > { %4127 = vmatmul.mubr.msk.f32.gmra.mrb[24].mxu1 %vm355_vm1, %v5822_v22 }
  0xaa   : > { %4350 = vmatmul.mubr.msk.f32.gmra.mrb[6].mxu0 %vm355_vm1, %v5249_v39  ;;  %4129 = vmatprep.mubr.msk.f32.mxu1 %vm355_vm1, %v5826_v21  ;;  %v802_v39 = vrot.slane %v5560_v63, 1 }
  0xab   : > { %4352 = vmatprep.mubr.msk.f32.mxu0 %vm355_vm1, %v5276_v47 }
  0xac   : > { %v5860_v18 = vsel %vm725_vm2, %v801_v23, %v802_v39  ;;  %v5871_v30 = vsel %vm725_vm2, %v802_v39, %v804_v9  ;;  %v6584_v39 = vld [vmem:[#allocation22_spill] sm:$0xff]  ;;  %v6591_v23 = vld [vmem:[#allocation28_spill] sm:$0xff]  ;;  %v6592_v9 = vld [vmem:[#allocation29_spill] sm:$0xff] }
  0xad   : > { %4130 = vmatmul.mubr.msk.f32.gmra.mrb[26].mxu1 %vm355_vm1, %v5839_v16 }
  0xae   : > { %4353 = vmatmul.mubr.msk.f32.gmra.mrb[8].mxu0 %vm355_vm1, %v5279_v48  ;;  %4132 = vmatprep.mubr.msk.f32.mxu1 %vm355_vm1, %v5843_v51 }
  0xaf   : > { %4355 = vmatprep.mubr.msk.f32.mxu0 %vm355_vm1, %v5306_v56 }
  0xb1   : > { %4133 = vmatmul.mubr.msk.f32.gmra.mrb[28].mxu1 %vm355_vm1, %v5856_v41 }
  0xb2   : > { %4356 = vmatmul.mubr.msk.f32.gmra.mrb[10].mxu0 %vm355_vm1, %v5309_v57  ;;  %4135 = vmatprep.mubr.msk.f32.mxu1 %vm355_vm1, %v5860_v18 }
  0xb3   : > { %4358 = vmatprep.mubr.msk.f32.mxu0 %vm355_vm1, %v5332_v0 }
  0xb5   : > { %4136 = vmatmul.mubr.msk.f32.gmra.mrb[30].mxu1 %vm355_vm1, %v5871_v30 }
  0xb6   : > { %4359 = vmatmul.mubr.msk.f32.gmra.mrb[12].mxu0 %vm355_vm1, %v5335_v1  ;;  %4140 = vmatprep.mubr.msk.f32.mxu1 %vm355_vm1, %v5194_v20  ;;  %v6586_v20 = vld [vmem:[#allocation23_spill] sm:$0xff] }
  0xb7   : > { %4361 = vmatprep.mubr.msk.f32.mxu0 %vm355_vm1, %v5390_v42 }
  0xb9   : > { %4141 = vmatmul.mubr.msk.f32.vlgmr.msra.gmra.mrb[0].mxu1 %vm355_vm1, %v5456_v26  ;;  %v6587_v26 = vld [vmem:[#allocation24_spill] sm:$0xff] }
  0xba   : > { %4362 = vmatmul.mubr.msk.f32.gmra.mrb[14].mxu0 %vm355_vm1, %v5406_v50  ;;  %4189 = vmatpush3.msra.mxu1 %v5594_v55  ;;  %v6588_v55 = vld [vmem:[#allocation25_spill] sm:$0xff] }
  0xbb   : > { %4364 = vmatprep.mubr.msk.f32.mxu0 %vm355_vm1, %v5415_v62  ;;  %4143 = vmatprep.mubr.msk.f32.mxu1 %vm355_vm1, %v6584_v39  ;;  %v6593_v39 = vld [vmem:[#allocation30_spill] sm:$0xff] }
  0xbc   : > { %4488 = vmatprep.subr.mxu1 %v6585_v49 }
  0xbd   : > { %4144 = vmatmul.mubr.msk.f32.gmra.mrb[2].mxu1 %vm355_vm1, %v6586_v20  ;;  %v6594_v20 = vld [vmem:[#allocation32_spill] sm:$0xff] }
  0xbe   : > { %4365 = vmatmul.mubr.msk.f32.gmra.mrb[16].mxu0 %vm355_vm1, %v5431_v12  ;;  %4146 = vmatprep.mubr.msk.f32.mxu1 %vm355_vm1, %v6587_v26 }
  0xbf   : > { %4367 = vmatprep.mubr.msk.f32.mxu0 %vm355_vm1, %v5443_v40 }
  0xc1   : > { %4147 = vmatmul.mubr.msk.f32.gmra.mrb[4].mxu1 %vm355_vm1, %v6588_v55 }
  0xc2   : > { %4368 = vmatmul.mubr.msk.f32.gmra.mrb[18].mxu0 %vm355_vm1, %v5466_v53  ;;  %4149 = vmatprep.mubr.msk.f32.mxu1 %vm355_vm1, %v6589_v52 }
  0xc3   : > { %4370 = vmatprep.mubr.msk.f32.mxu0 %vm355_vm1, %v5473_v8 }
  0xc5   : > { %4150 = vmatmul.mubr.msk.f32.gmra.mrb[6].mxu1 %vm355_vm1, %v6590_v46 }
  0xc6   : > { %4371 = vmatmul.mubr.msk.f32.gmra.mrb[20].mxu0 %vm355_vm1, %v5489_v61  ;;  %4152 = vmatprep.mubr.msk.f32.mxu1 %vm355_vm1, %v6591_v23 }
  0xc7   : > { %4373 = vmatprep.mubr.msk.f32.mxu0 %vm355_vm1, %v5496_v10  ;;  %v6596_v10 = vld [vmem:[#allocation36_spill] sm:$0xff] }
  0xc9   : > { %4153 = vmatmul.mubr.msk.f32.gmra.mrb[8].mxu1 %vm355_vm1, %v6592_v9 }
  0xca   : > { %4374 = vmatmul.mubr.msk.f32.gmra.mrb[22].mxu0 %vm355_vm1, %v5512_v33  ;;  %4155 = vmatprep.mubr.msk.f32.mxu1 %vm355_vm1, %v6593_v39  ;;  %v6595_v33 = vld [vmem:[#allocation34_spill] sm:$0xff] }
  0xcb   : > { %4376 = vmatprep.mubr.msk.f32.mxu0 %vm355_vm1, %v5519_v37  ;;  %v6597_v37 = vld [vmem:[#allocation38_spill] sm:$0xff] }
  0xcd   : > { %4156 = vmatmul.mubr.msk.f32.gmra.mrb[10].mxu1 %vm355_vm1, %v6594_v20 }
  0xce   : > { %4377 = vmatmul.mubr.msk.f32.gmra.mrb[24].mxu0 %vm355_vm1, %v5536_v27  ;;  %4158 = vmatprep.mubr.msk.f32.mxu1 %vm355_vm1, %v6595_v33  ;;  %v5940_v27 = vld [vmem:[%s5109_s7 + $0x198] sm:$0xff] }
  0xcf   : > { %4379 = vmatprep.mubr.msk.f32.mxu0 %vm355_vm1, %v5544_v2  ;;  %v6598_v2 = vld [vmem:[#allocation40_spill] sm:$0xff] }
  0xd1   : > { %4159 = vmatmul.mubr.msk.f32.gmra.mrb[12].mxu1 %vm355_vm1, %v6596_v10  ;;  %v6599_v10 = vld [vmem:[#allocation42_spill] sm:$0xff] }
  0xd2   : > { %4380 = vmatmul.mubr.msk.f32.gmra.mrb[26].mxu0 %vm355_vm1, %v5560_v63  ;;  %4161 = vmatprep.mubr.msk.f32.mxu1 %vm355_vm1, %v6597_v37  ;;  %v5949_v63 = vld [vmem:[%s5109_s7 + $0x1a0] sm:$0xff] }
  0xd3   : > { %4382 = vmatprep.mubr.msk.f32.mxu0 %vm355_vm1, %v5698_v43 }
  0xd5   : > { %4162 = vmatmul.mubr.msk.f32.gmra.mrb[14].mxu1 %vm355_vm1, %v6598_v2  ;;  %v6601_v2 = vld [vmem:[#allocation46_spill] sm:$0xff] }
  0xd6   : > { %4383 = vmatmul.mubr.msk.f32.gmra.mrb[28].mxu0 %vm355_vm1, %v5701_v28  ;;  %4164 = vmatprep.mubr.msk.f32.mxu1 %vm355_vm1, %v6599_v10  ;;  %v6600_v10 = vld [vmem:[#allocation16_spill] sm:$0xff] }
  0xd7   : > { %4385 = vmatprep.mubr.msk.f32.mxu0 %vm355_vm1, %v5940_v27 }
  0xd9   : > { %4165 = vmatmul.mubr.msk.f32.gmra.mrb[16].mxu1 %vm355_vm1, %v5580_v14  ;;  %v6602_v14 = vld [vmem:[#allocation18_spill] sm:$0xff] }
  0xda   : > { %4386 = vmatmul.mubr.msk.f32.gmra.mrb[30].mxu0 %vm355_vm1, %v5949_v63  ;;  %4167 = vmatprep.mubr.msk.f32.mxu1 %vm355_vm1, %v5586_v44  ;;  %v6604_v44 = vld [vmem:[#allocation19_spill] sm:$0xff] }
  0xdb   : > { %4390 = vmatprep.mubr.msk.f32.mxu0 %vm355_vm1, %v5227_v31  ;;  %v6603_v31 = vld [vmem:[#allocation47_spill] sm:$0xff] }
  0xdd   : > { %4168 = vmatmul.mubr.msk.f32.gmra.mrb[18].mxu1 %vm355_vm1, %v5603_v45  ;;  %v6606_v45 = vld [vmem:[#allocation20_spill] sm:$0xff] }
  0xde   : > { %4391 = vmatmul.mubr.msk.f32.vlgmr.msra.gmra.mrb[0].mxu0 %vm355_vm1, %v5232_v32  ;;  %4170 = vmatprep.mubr.msk.f32.mxu1 %vm355_vm1, %v6601_v2  ;;  %v6605_v32 = vld [vmem:[#allocation48_spill] sm:$0xff]  ;;  %v6609_v2 = vld [vmem:[#allocation50_spill] sm:$0xff] }
  0xdf   : > { %4439 = vmatpush3.msra.mxu0 %v5775_v5  ;;  %4393 = vmatprep.mubr.msk.f32.mxu0 %vm355_vm1, %v6600_v10  ;;  %v6607_v5 = vld [vmem:[#allocation49_spill] sm:$0xff] }
  0xe0   : > { %v6608_v10 = vld [vmem:[#allocation21_spill] sm:$0xff] }
  0xe1   : > { %4171 = vmatmul.mubr.msk.f32.gmra.mrb[20].mxu1 %vm355_vm1, %v6603_v31 }
  0xe2   : > { %4394 = vmatmul.mubr.msk.f32.gmra.mrb[2].mxu0 %vm355_vm1, %v6602_v14  ;;  %4173 = vmatprep.mubr.msk.f32.mxu1 %vm355_vm1, %v6605_v32  ;;  %v6610_v14 = vld [vmem:[#allocation51_spill] sm:$0xff] }
  0xe3   : > { %4396 = vmatprep.mubr.msk.f32.mxu0 %vm355_vm1, %v6604_v44  ;;  %v6611_v44 = vld [vmem:[#allocation52_spill] sm:$0xff] }
  0xe5   : > { %4174 = vmatmul.mubr.msk.f32.gmra.mrb[22].mxu1 %vm355_vm1, %v6607_v5 }
  0xe6   : > { %4397 = vmatmul.mubr.msk.f32.gmra.mrb[4].mxu0 %vm355_vm1, %v6606_v45  ;;  %4176 = vmatprep.mubr.msk.f32.mxu1 %vm355_vm1, %v6609_v2  ;;  %v6612_v45 = vld [vmem:[#allocation53_spill] sm:$0xff] }
  0xe7   : > { %4399 = vmatprep.mubr.msk.f32.mxu0 %vm355_vm1, %v6608_v10  ;;  %v6613_v10 = vld [vmem:[#allocation54_spill] sm:$0xff] }
  0xe9   : > { %4177 = vmatmul.mubr.msk.f32.gmra.mrb[24].mxu1 %vm355_vm1, %v6610_v14 }
  0xea   : > { %4400 = vmatmul.mubr.msk.f32.gmra.mrb[6].mxu0 %vm355_vm1, %v5318_v58  ;;  %4179 = vmatprep.mubr.msk.f32.mxu1 %vm355_vm1, %v6611_v44  ;;  %v6614_v58 = vld [vmem:[#allocation55_spill] sm:$0xff] }
  0xeb   : > { %4402 = vmatprep.mubr.msk.f32.mxu0 %vm355_vm1, %v5324_v60  ;;  %v6615_v60 = vld [vmem:[#allocation57_spill] sm:$0xff] }
  0xed   : > { %4180 = vmatmul.mubr.msk.f32.gmra.mrb[26].mxu1 %vm355_vm1, %v6612_v45 }
  0xee   : > { %4403 = vmatmul.mubr.msk.f32.gmra.mrb[8].mxu0 %vm355_vm1, %v5344_v4  ;;  %4182 = vmatprep.mubr.msk.f32.mxu1 %vm355_vm1, %v6613_v10  ;;  %v6616_v4 = vld [vmem:[#allocation12_spill] sm:$0xff] }
  0xef   : > { %4405 = vmatprep.mubr.msk.f32.mxu0 %vm355_vm1, %v5350_v11  ;;  %v6617_v11 = vld [vmem:[#allocation13_spill] sm:$0xff] }
  0xf1   : > { %4183 = vmatmul.mubr.msk.f32.gmra.mrb[28].mxu1 %vm355_vm1, %v6614_v58 }
  0xf2   : > { %4406 = vmatmul.mubr.msk.f32.gmra.mrb[10].mxu0 %vm355_vm1, %v5364_v17  ;;  %4185 = vmatprep.mubr.msk.f32.mxu1 %vm355_vm1, %v5716_v3  ;;  %v6618_v17 = vld [vmem:[#allocation14_spill] sm:$0xff] }
  0xf3   : > { %4408 = vmatprep.mubr.msk.f32.mxu0 %vm355_vm1, %v5370_v24 }
  0xf5   : > { %4186 = vmatmul.mubr.msk.f32.gmra.mrb[30].mxu1 %vm355_vm1, %v6615_v60 }
  0xf6   : > { %4409 = vmatmul.mubr.msk.f32.gmra.mrb[12].mxu0 %vm355_vm1, %v5382_v35  ;;  %4190 = vmatprep.mubr.msk.f32.mxu1 %vm355_vm1, %v6616_v4  ;;  %v2602_v35 = vrot.slane %v5949_v63, 1  ;;  %v6076_v4 = vld [vmem:[%s5109_s7 + $0x1a8] sm:$0x3] }
  0xf7   : > { %4411 = vmatprep.mubr.msk.f32.mxu0 %vm355_vm1, %v5753_v7 }
  0xf9   : > { %4191 = vmatmul.mubr.msk.f32.vlgmr.msra.gmra.mrb[0].mxu1 %vm355_vm1, %v6617_v11 }
  0xfa   : > { %4412 = vmatmul.mubr.msk.f32.gmra.mrb[14].mxu0 %vm355_vm1, %v5766_v13  ;;  %4489 = vmatpush3.msra.mxu1 %v6585_v49 }
  0xfb   : > { %4414 = vmatprep.mubr.msk.f32.mxu0 %vm355_vm1, %v5772_v54  ;;  %4193 = vmatprep.mubr.msk.f32.mxu1 %vm355_vm1, %v5178_v15  ;;  %v6619_v15 = vld [vmem:[#allocation15_spill] sm:$0xff] }
  0xfd   : > { %4194 = vmatmul.mubr.msk.f32.gmra.mrb[2].mxu1 %vm355_vm1, %v6618_v17 }
  0xfe   : > { %4415 = vmatmul.mubr.msk.f32.gmra.mrb[16].mxu0 %vm355_vm1, %v5785_v36  ;;  %4196 = vmatprep.mubr.msk.f32.mxu1 %vm355_vm1, %v5189_v19  ;;  %v6620_v19 = vld [vmem:[#allocation17_spill] sm:$0xff] }
  0xff   : > { %4417 = vmatprep.mubr.msk.f32.mxu0 %vm355_vm1, %v5791_v34 }
 0x101   : > { %4197 = vmatmul.mubr.msk.f32.gmra.mrb[4].mxu1 %vm355_vm1, %v5207_v25  ;;  %v1799_v25 = vrot.slane %v5698_v43, 1 }
 0x102   : > { %4418 = vmatmul.mubr.msk.f32.gmra.mrb[18].mxu0 %vm355_vm1, %v5805_v6  ;;  %4199 = vmatprep.mubr.msk.f32.mxu1 %vm355_vm1, %v5217_v29  ;;  %v1800_v29 = vrot.slane %v5701_v28, 1 }
 0x103   : > { %4420 = vmatprep.mubr.msk.f32.mxu0 %vm355_vm1, %v5809_v59 }
 0x104   : > { %v6073_v49 = vsel %vm725_vm2, %v1799_v25, %v1800_v29 }
 0x105   : > { %4200 = vmatmul.mubr.msk.f32.gmra.mrb[6].mxu1 %vm355_vm1, %v6619_v15  ;;  %v326_v15 = vld [vmem:[#allocation2 + $0x20] sm:$0xff] }
 0x106   : > { %4421 = vmatmul.mubr.msk.f32.gmra.mrb[20].mxu0 %vm355_vm1, %v5822_v22  ;;  %4202 = vmatprep.mubr.msk.f32.mxu1 %vm355_vm1, %v5246_v38  ;;  %v6621_v38 = vld [vmem:[#allocation56_spill] sm:$0xff] }
 0x107   : > { %4423 = vmatprep.mubr.msk.f32.mxu0 %vm355_vm1, %v5826_v21  ;;  %v1802_v24 = vrot.slane %v6621_v38, 1 }
 0x109   : > { %4203 = vmatmul.mubr.msk.f32.gmra.mrb[8].mxu1 %vm355_vm1, %v6620_v19 }
 0x10a   : > { %4424 = vmatmul.mubr.msk.f32.gmra.mrb[22].mxu0 %vm355_vm1, %v5839_v16  ;;  %4205 = vmatprep.mubr.msk.f32.mxu1 %vm355_vm1, %v5276_v47  ;;  %v2601_v47 = vrot.slane %v5940_v27, 1 }
 0x10b   : > { %4426 = vmatprep.mubr.msk.f32.mxu0 %vm355_vm1, %v5843_v51 }
 0x10c   : > { %v2603_v11 = vsel %vm725_vm2, %v2601_v47, %v2602_v35  ;;  %v329_v47 = vld [vmem:[#allocation2 + $0x38] sm:$0xff] }
 0x10d   : > { %4206 = vmatmul.mubr.msk.f32.gmra.mrb[10].mxu1 %vm355_vm1, %v5279_v48  ;;  %v6085_v48 = vsel %vm725_vm2, %v1800_v29, %v1802_v24 }
 0x10e   : > { %4427 = vmatmul.mubr.msk.f32.gmra.mrb[24].mxu0 %vm355_vm1, %v5856_v41  ;;  %4208 = vmatprep.mubr.msk.f32.mxu1 %vm355_vm1, %v5306_v56  ;;  %v2604_v56 = vrot.slane %v6076_v4, 1 }
 0x10f   : > { %4429 = vmatprep.mubr.msk.f32.mxu0 %vm355_vm1, %v5860_v18 }
 0x111   : > { %4209 = vmatmul.mubr.msk.f32.gmra.mrb[12].mxu1 %vm355_vm1, %v5309_v57  ;;  %v2605_v57 = vsel %vm725_vm2, %v2602_v35, %v2604_v56 }
 0x112   : > { %4430 = vmatmul.mubr.msk.f32.gmra.mrb[26].mxu0 %vm355_vm1, %v5871_v30  ;;  %4211 = vmatprep.mubr.msk.f32.mxu1 %vm355_vm1, %v5332_v0  ;;  %v6622_v0 = vld [vmem:[#allocation31_spill] sm:$0xff] }
 0x113   : > { %4432 = vmatprep.mubr.msk.f32.mxu0 %vm355_vm1, %v6073_v49 }
 0x115   : > { %4212 = vmatmul.mubr.msk.f32.gmra.mrb[14].mxu1 %vm355_vm1, %v5335_v1  ;;  %v6623_v1 = vld [vmem:[#allocation33_spill] sm:$0xff] }
 0x116   : > { %4433 = vmatmul.mubr.msk.f32.gmra.mrb[28].mxu0 %vm355_vm1, %v6085_v48  ;;  %4214 = vmatprep.mubr.msk.f32.mxu1 %vm355_vm1, %v5390_v42  ;;  %v6625_v42 = vld [vmem:[#allocation36_spill] sm:$0xff] }
 0x117   : > { %4435 = vmatprep.mubr.msk.f32.mxu0 %vm355_vm1, %v2603_v11 }
 0x119   : > { %4215 = vmatmul.mubr.msk.f32.gmra.mrb[16].mxu1 %vm355_vm1, %v5406_v50  ;;  %v6626_v50 = vld [vmem:[#allocation37_spill] sm:$0xff] }
 0x11a   : > { %4436 = vmatmul.mubr.msk.f32.gmra.mrb[30].mxu0 %vm355_vm1, %v2605_v57  ;;  %4217 = vmatprep.mubr.msk.f32.mxu1 %vm355_vm1, %v5415_v62  ;;  %v6627_v62 = vld [vmem:[#allocation39_spill] sm:$0xff] }
 0x11b   : > { %4440 = vmatprep.mubr.msk.f32.mxu0 %vm355_vm1, %v6587_v26  ;;  %v6634_v26 = vld [vmem:[#allocation46_spill] sm:$0xff] }
 0x11d   : > { %4218 = vmatmul.mubr.msk.f32.gmra.mrb[18].mxu1 %vm355_vm1, %v5431_v12  ;;  %v6628_v12 = vld [vmem:[#allocation40_spill] sm:$0xff] }
 0x11e   : > { %4441 = vmatmul.mubr.msk.f32.vlgmr.msra.gmra.mrb[0].mxu0 %vm355_vm1, %v6588_v55  ;;  %4220 = vmatprep.mubr.msk.f32.mxu1 %vm355_vm1, %v5443_v40  ;;  %v6629_v40 = vld [vmem:[#allocation41_spill] sm:$0xff] }
 0x11f   : > { %4443 = vmatprep.mubr.msk.f32.mxu0 %vm355_vm1, %v6589_v52 }
 0x121   : > { %4221 = vmatmul.mubr.msk.f32.gmra.mrb[20].mxu1 %vm355_vm1, %v5466_v53  ;;  %v6630_v53 = vld [vmem:[#allocation42_spill] sm:$0xff] }
 0x122   : > { %4444 = vmatmul.mubr.msk.f32.gmra.mrb[2].mxu0 %vm355_vm1, %v6590_v46  ;;  %4223 = vmatprep.mubr.msk.f32.mxu1 %vm355_vm1, %v5473_v8  ;;  %v6624_v8 = vld [vmem:[#allocation35_spill] sm:$0xff] }
 0x123   : > { %4446 = vmatprep.mubr.msk.f32.mxu0 %vm355_vm1, %v6591_v23  ;;  %v323_v23 = vld [vmem:[#allocation2 + $0x8] sm:$0xff] }
 0x125   : > { %4224 = vmatmul.mubr.msk.f32.gmra.mrb[22].mxu1 %vm355_vm1, %v5489_v61  ;;  %v6631_v61 = vld [vmem:[#allocation43_spill] sm:$0xff] }
 0x126   : > { %4447 = vmatmul.mubr.msk.f32.gmra.mrb[4].mxu0 %vm355_vm1, %v6592_v9  ;;  %4226 = vmatprep.mubr.msk.f32.mxu1 %vm355_vm1, %v6622_v0  ;;  %v322_v9 = vld [vmem:[#allocation2] sm:$0xff]  ;;  %v331_v0 = vld [vmem:[#allocation2 + $0x48] sm:$0xff] }
 0x127   : > { %4449 = vmatprep.mubr.msk.f32.mxu0 %vm355_vm1, %v6593_v39 }
 0x129   : > { %4227 = vmatmul.mubr.msk.f32.gmra.mrb[24].mxu1 %vm355_vm1, %v6623_v1 }
 0x12a   : > { %4450 = vmatmul.mubr.msk.f32.gmra.mrb[6].mxu0 %vm355_vm1, %v6594_v20  ;;  %4229 = vmatprep.mubr.msk.f32.mxu1 %vm355_vm1, %v6624_v8  ;;  %v330_v8 = vld [vmem:[#allocation2 + $0x40] sm:$0xff] }
 0x12b   : > { %4452 = vmatprep.mubr.msk.f32.mxu0 %vm355_vm1, %v6595_v33  ;;  %v6633_v33 = vld [vmem:[#allocation45_spill] sm:$0xff] }
 0x12d   : > { %4230 = vmatmul.mubr.msk.f32.gmra.mrb[26].mxu1 %vm355_vm1, %v6626_v50 }
 0x12e   : > { %4453 = vmatmul.mubr.msk.f32.gmra.mrb[8].mxu0 %vm355_vm1, %v6625_v42  ;;  %4232 = vmatprep.mubr.msk.f32.mxu1 %vm355_vm1, %v6627_v62 }
 0x12f   : > { %4455 = vmatprep.mubr.msk.f32.mxu0 %vm355_vm1, %v6597_v37  ;;  %v6632_v37 = vld [vmem:[#allocation44_spill] sm:$0xff] }
 0x131   : > { %4233 = vmatmul.mubr.msk.f32.gmra.mrb[28].mxu1 %vm355_vm1, %v6629_v40 }
 0x132   : > { %4456 = vmatmul.mubr.msk.f32.gmra.mrb[10].mxu0 %vm355_vm1, %v6628_v12  ;;  %4235 = vmatprep.mubr.msk.f32.mxu1 %vm355_vm1, %v5698_v43  ;;  %v2869_v43 = vrot.slane %v5940_v27, 2 }
 0x133   : > { %4458 = vmatprep.mubr.msk.f32.mxu0 %vm355_vm1, %v6630_v53  ;;  %v333_v53 = vld [vmem:[#allocation2 + $0x58] sm:$0xff] }
 0x135   : > { %4236 = vmatmul.mubr.msk.f32.gmra.mrb[30].mxu1 %vm355_vm1, %v5701_v28  ;;  %v6635_v28 = vld [vmem:[#allocation58_spill] sm:$0xff] }
 0x136   : > { %4459 = vmatmul.mubr.msk.f32.gmra.mrb[12].mxu0 %vm355_vm1, %v6631_v61  ;;  %4264 = vmatprep.mubr.msk.f32.mxu1 %vm355_vm1, %v5753_v7  ;;  %v6636_v7 = vld [vmem:[#allocation59_spill] sm:$0xff] }
 0x137   : > { %4461 = vmatprep.mubr.msk.f32.mxu0 %vm355_vm1, %v6632_v37  ;;  %v332_v37 = vld [vmem:[#allocation2 + $0x50] sm:$0xff] }
 0x139   : > { %4265 = vmatmul.mubr.msk.f32.vlgmr.msra.gmra.mrb[16].mxu1 %vm355_vm1, %v5766_v13 }
 0x13a   : > { %4462 = vmatmul.mubr.msk.f32.gmra.mrb[14].mxu0 %vm355_vm1, %v6633_v33  ;;  %4267 = vmatprep.mubr.msk.f32.mxu1 %vm355_vm1, %v5772_v54 }
 0x13b   : > { %4464 = vmatprep.mubr.msk.f32.mxu0 %vm355_vm1, %v6634_v26 }
 0x13d   : > { %4268 = vmatmul.mubr.msk.f32.gmra.mrb[18].mxu1 %vm355_vm1, %v5785_v36 }
 0x13e   : > { %4465 = vmatmul.mubr.msk.f32.gmra.mrb[16].mxu0 %vm355_vm1, %v6603_v31  ;;  %4270 = vmatprep.mubr.msk.f32.mxu1 %vm355_vm1, %v5791_v34  ;;  %v325_v31 = vld [vmem:[#allocation2 + $0x18] sm:$0xff] }
 0x13f   : > { %4467 = vmatprep.mubr.msk.f32.mxu0 %vm355_vm1, %v6605_v32 }
 0x141   : > { %4271 = vmatmul.mubr.msk.f32.gmra.mrb[20].mxu1 %vm355_vm1, %v5805_v6 }
 0x142   : > { %4468 = vmatmul.mubr.msk.f32.gmra.mrb[18].mxu0 %vm355_vm1, %v6607_v5  ;;  %4273 = vmatprep.mubr.msk.f32.mxu1 %vm355_vm1, %v5809_v59  ;;  %v324_v5 = vld [vmem:[#allocation2 + $0x10] sm:$0xff] }
 0x143   : > { %4470 = vmatprep.mubr.msk.f32.mxu0 %vm355_vm1, %v6609_v2  ;;  %v2870_v2 = vrot.slane %v5949_v63, 2 }
 0x145   : > { %4274 = vmatmul.mubr.msk.f32.gmra.mrb[22].mxu1 %vm355_vm1, %v5822_v22  ;;  %v2871_v54 = vsel %vm1129_vm3, %v2869_v43, %v2870_v2 }
 0x146   : > { %4471 = vmatmul.mubr.msk.f32.gmra.mrb[20].mxu0 %vm355_vm1, %v6610_v14  ;;  %4276 = vmatprep.mubr.msk.f32.mxu1 %vm355_vm1, %v5826_v21 }
 0x147   : > { %4473 = vmatprep.mubr.msk.f32.mxu0 %vm355_vm1, %v6611_v44 }
 0x149   : > { %4277 = vmatmul.mubr.msk.f32.gmra.mrb[24].mxu1 %vm355_vm1, %v5839_v16 }
 0x14a   : > { %4474 = vmatmul.mubr.msk.f32.gmra.mrb[22].mxu0 %vm355_vm1, %v6612_v45  ;;  %4279 = vmatprep.mubr.msk.f32.mxu1 %vm355_vm1, %v5843_v51 }
 0x14b   : > { %4476 = vmatprep.mubr.msk.f32.mxu0 %vm355_vm1, %v6613_v10 }
 0x14d   : > { %4280 = vmatmul.mubr.msk.f32.gmra.mrb[26].mxu1 %vm355_vm1, %v5856_v41 }
 0x14e   : > { %4477 = vmatmul.mubr.msk.f32.gmra.mrb[24].mxu0 %vm355_vm1, %v6614_v58  ;;  %4282 = vmatprep.mubr.msk.f32.mxu1 %vm355_vm1, %v5860_v18 }
 0x14f   : > { %4479 = vmatprep.mubr.msk.f32.mxu0 %vm355_vm1, %v5716_v3  ;;  %v2872_v3 = vrot.slane %v6076_v4, 2 }
 0x151   : > { %4283 = vmatmul.mubr.msk.f32.gmra.mrb[28].mxu1 %vm355_vm1, %v5871_v30  ;;  %v2873_v27 = vsel %vm1129_vm3, %v2870_v2, %v2872_v3  ;;  %v335_v3 = vld [vmem:[#allocation2 + $0x68] sm:$0xff] }
 0x152   : > { %4480 = vmatmul.mubr.msk.f32.gmra.mrb[26].mxu0 %vm355_vm1, %v6615_v60  ;;  %4285 = vmatprep.mubr.msk.f32.mxu1 %vm355_vm1, %v6073_v49  ;;  %v327_v60 = vld [vmem:[#allocation2 + $0x28] sm:$0xff]  ;;  %v328_v49 = vld [vmem:[#allocation2 + $0x30] sm:$0xff] }
 0x153   : > { %4482 = vmatprep.mubr.msk.f32.mxu0 %vm355_vm1, %v6635_v28 }
 0x155   : > { %4286 = vmatmul.mubr.msk.f32.gmra.mrb[30].mxu1 %vm355_vm1, %v6085_v48 }
 0x156   : > { %4483 = vmatmul.mubr.msk.f32.gmra.mrb[28].mxu0 %vm355_vm1, %v6636_v7  ;;  %v334_v7 = vld [vmem:[#allocation2 + $0x60] sm:$0xff] }
 0x157   : > { %4485 = vmatprep.mubr.msk.f32.mxu0 %vm355_vm1, %v2871_v54 }
 0x15a   : > { %4486 = vmatmul.mubr.msk.f32.gmra.mrb[30].mxu0 %vm355_vm1, %v2873_v27 }
 0x1cc   : > { %v4192_v63 = vpop.f32.mrb[0].mxu1 }
 0x1cd   : > { %v1607_v13 = vpop.f32.mrb[1].mxu1  ;;  %v4490_v39 = vadd.f32 %v4192_v63, %v323_v23  ;;  %v338_v23 = vld [vmem:[#allocation2 + $0x80] sm:$0xff] }
 0x1ce   : > { %v4492_v20 = vadd.f32 %v1607_v13, %v322_v9 }
 0x1d0   : > { %v4195_v36 = vpop.f32.mrb[2].mxu1 }
 0x1d1   : > { %v1617_v34 = vpop.f32.mrb[3].mxu1  ;;  %v4494_v10 = vadd.f32 %v4195_v36, %v325_v31 }
 0x1d2   : > { %v4496_v58 = vadd.f32 %v1617_v34, %v324_v5 }
 0x1d4   : > { %v4198_v6 = vpop.f32.mrb[4].mxu1 }
 0x1d5   : > { %v1627_v59 = vpop.f32.mrb[5].mxu1  ;;  %v4498_v38 = vadd.f32 %v4198_v6, %v327_v60  ;;  %v337_v6 = vld [vmem:[#allocation2 + $0x78] sm:$0xff] }
 0x1d6   : > { %v4500_v24 = vadd.f32 %v1627_v59, %v326_v15 }
 0x1d8   : > { %v4201_v22 = vpop.f32.mrb[6].mxu1 }
 0x1d9   : > { %v1637_v21 = vpop.f32.mrb[7].mxu1  ;;  %v4502_v11 = vadd.f32 %v4201_v22, %v329_v47  ;;  %v336_v22 = vld [vmem:[#allocation2 + $0x70] sm:$0xff] }
 0x1da   : > { %v4504_v57 = vadd.f32 %v1637_v21, %v328_v49 }
 0x1dc   : > { %v4204_v16 = vpop.f32.mrb[8].mxu1 }
 0x1dd   : > { %v1647_v51 = vpop.f32.mrb[9].mxu1  ;;  %v4506_v12 = vadd.f32 %v4204_v16, %v331_v0 }
 0x1de   : > { %v4508_v40 = vadd.f32 %v1647_v51, %v330_v8 }
 0x1e0   : > { %v4207_v41 = vpop.f32.mrb[10].mxu1 }
 0x1e1   : > { %v1657_v18 = vpop.f32.mrb[11].mxu1  ;;  %v4510_v2 = vadd.f32 %v4207_v41, %v333_v53  ;;  %v339_v41 = vld [vmem:[#allocation2 + $0x88] sm:$0xff] }
 0x1e2   : > { %v4512_v28 = vadd.f32 %v1657_v18, %v332_v37  ;;  %v347_v53 = vld [vmem:[#allocation2 + $0xc8] sm:$0xff] }
 0x1e4   : > { %v6229_v30 = vpop.f32.mrb[12].mxu1 }
 0x1e5   : > { %v6231_v55 = vpop.f32.mrb[13].mxu1  ;;  %v4514_v36 = vadd.f32 %v6229_v30, %v335_v3 }
 0x1e6   : > { %v4516_v34 = vadd.f32 %v6231_v55, %v334_v7  ;;  %v349_v7 = vld [vmem:[#allocation2 + $0xd8] sm:$0xff] }
 0x1e8   : > { %v6233_v52 = vpop.f32.mrb[14].mxu1 }
 0x1e9   : > { %v6235_v46 = vpop.f32.mrb[15].mxu1  ;;  %v4518_v18 = vadd.f32 %v6233_v52, %v337_v6 }
 0x1ea   : > { %v4520_v30 = vadd.f32 %v6235_v46, %v336_v22 }
 0x1f1   : > { %v4442_v32 = vpop.f32.mrb[0].mxu0 }
 0x1f2   : > { %v4491_v14 = vadd.f32 %v4490_v39, %v4442_v32  ;;  %v2946_v44 = vpop.f32.mrb[1].mxu0 }
 0x1f3   : > { %v4493_v45 = vadd.f32 %v4492_v20, %v2946_v44  ;;  %v341_v44 = vld [vmem:[#allocation2 + $0x98] sm:$0xff] }
 0x1f4   : > { %3139 = vst.msk [vmem:[#allocation2 + $0x8] sm:$0xff] %vm3137_vm4, %v4491_v14 }
 0x1f5   : > { %3138 = vst.msk [vmem:[#allocation2] sm:$0xff] %vm3137_vm4, %v4493_v45  ;;  %v4445_v17 = vpop.f32.mrb[2].mxu0  ;;  %v340_v45 = vld [vmem:[#allocation2 + $0x90] sm:$0xff] }
 0x1f6   : > { %v4495_v19 = vadd.f32 %v4494_v10, %v4445_v17  ;;  %v2956_v25 = vpop.f32.mrb[3].mxu0 }
 0x1f7   : > { %v4497_v29 = vadd.f32 %v4496_v58, %v2956_v25  ;;  %v343_v25 = vld [vmem:[#allocation2 + $0xa8] sm:$0xff] }
 0x1f8   : > { %3141 = vst.msk [vmem:[#allocation2 + $0x18] sm:$0xff] %vm3137_vm4, %v4495_v19 }
 0x1f9   : > { %3140 = vst.msk [vmem:[#allocation2 + $0x10] sm:$0xff] %vm3137_vm4, %v4497_v29  ;;  %v4448_v35 = vpop.f32.mrb[4].mxu0  ;;  %v342_v29 = vld [vmem:[#allocation2 + $0xa0] sm:$0xff] }
 0x1fa   : > { %v4499_v4 = vadd.f32 %v4498_v38, %v4448_v35  ;;  %v2966_v48 = vpop.f32.mrb[5].mxu0 }
 0x1fb   : > { %v4501_v56 = vadd.f32 %v4500_v24, %v2966_v48 }
 0x1fc   : > { %3143 = vst.msk [vmem:[#allocation2 + $0x28] sm:$0xff] %vm3137_vm4, %v4499_v4 }
 0x1fd   : > { %3142 = vst.msk [vmem:[#allocation2 + $0x20] sm:$0xff] %vm3137_vm4, %v4501_v56  ;;  %v4451_v1 = vpop.f32.mrb[6].mxu0 }
 0x1fe   : > { %v4503_v42 = vadd.f32 %v4502_v11, %v4451_v1  ;;  %v2976_v50 = vpop.f32.mrb[7].mxu0  ;;  %v345_v11 = vld [vmem:[#allocation2 + $0xb8] sm:$0xff] }
 0x1ff   : > { %v4505_v62 = vadd.f32 %v4504_v57, %v2976_v50  ;;  %v344_v57 = vld [vmem:[#allocation2 + $0xb0] sm:$0xff] }
 0x200   : > { %3145 = vst.msk [vmem:[#allocation2 + $0x38] sm:$0xff] %vm3137_vm4, %v4503_v42 }
 0x201   : > { %3144 = vst.msk [vmem:[#allocation2 + $0x30] sm:$0xff] %vm3137_vm4, %v4505_v62  ;;  %v4454_v61 = vpop.f32.mrb[8].mxu0 }
 0x202   : > { %v4507_v33 = vadd.f32 %v4506_v12, %v4454_v61  ;;  %v2986_v26 = vpop.f32.mrb[9].mxu0  ;;  %v346_v61 = vld [vmem:[#allocation2 + $0xc0] sm:$0xff] }
 0x203   : > { %v4509_v43 = vadd.f32 %v4508_v40, %v2986_v26 }
 0x204   : > { %3147 = vst.msk [vmem:[#allocation2 + $0x48] sm:$0xff] %vm3137_vm4, %v4507_v33 }
 0x205   : > { %3146 = vst.msk [vmem:[#allocation2 + $0x40] sm:$0xff] %vm3137_vm4, %v4509_v43  ;;  %v4457_v54 = vpop.f32.mrb[10].mxu0 }
 0x206   : > { %v4511_v27 = vadd.f32 %v4510_v2, %v4457_v54  ;;  %v2996_v63 = vpop.f32.mrb[11].mxu0 }
 0x207   : > { %v4513_v13 = vadd.f32 %v4512_v28, %v2996_v63 }
 0x208   : > { %3149 = vst.msk [vmem:[#allocation2 + $0x58] sm:$0xff] %vm3137_vm4, %v4511_v27  ;;  %v348_v27 = vld [vmem:[#allocation2 + $0xd0] sm:$0xff] }
 0x209   : > { %3148 = vst.msk [vmem:[#allocation2 + $0x50] sm:$0xff] %vm3137_vm4, %v4513_v13  ;;  %v4460_v59 = vpop.f32.mrb[12].mxu0 }
 0x20a   : > { %v4515_v21 = vadd.f32 %v4514_v36, %v4460_v59  ;;  %v3006_v16 = vpop.f32.mrb[13].mxu0 }
 0x20b   : > { %v4517_v51 = vadd.f32 %v4516_v34, %v3006_v16  ;;  %v351_v16 = vld [vmem:[#allocation2 + $0xe8] sm:$0xff] }
 0x20c   : > { %3151 = vst.msk [vmem:[#allocation2 + $0x68] sm:$0xff] %vm3137_vm4, %v4515_v21  ;;  %v4266_v55 = vpop.f32.mrb[16].mxu1 }
 0x20d   : > { %3150 = vst.msk [vmem:[#allocation2 + $0x60] sm:$0xff] %vm3137_vm4, %v4517_v51  ;;  %v4463_v9 = vpop.f32.mrb[14].mxu0  ;;  %v4522_v31 = vadd.f32 %v4266_v55, %v339_v41  ;;  %v1956_v32 = vpop.f32.mrb[17].mxu1  ;;  %v350_v51 = vld [vmem:[#allocation2 + $0xe0] sm:$0xff] }
 0x20e   : > { %v4519_v39 = vadd.f32 %v4518_v18, %v4463_v9  ;;  %v3016_v20 = vpop.f32.mrb[15].mxu0  ;;  %v4524_v14 = vadd.f32 %v1956_v32, %v338_v23  ;;  %v352_v32 = vld [vmem:[#allocation2 + $0xf0] sm:$0xff] }
 0x20f   : > { %v4521_v5 = vadd.f32 %v4520_v30, %v3016_v20 }
 0x210   : > { %3153 = vst.msk [vmem:[#allocation2 + $0x78] sm:$0xff] %vm3137_vm4, %v4519_v39  ;;  %v4269_v10 = vpop.f32.mrb[18].mxu1 }
 0x211   : > { %3152 = vst.msk [vmem:[#allocation2 + $0x70] sm:$0xff] %vm3137_vm4, %v4521_v5  ;;  %v4466_v52 = vpop.f32.mrb[16].mxu0  ;;  %v4526_v60 = vadd.f32 %v4269_v10, %v341_v44  ;;  %v1966_v17 = vpop.f32.mrb[19].mxu1 }
 0x212   : > { %v4523_v58 = vadd.f32 %v4522_v31, %v4466_v52  ;;  %v3026_v46 = vpop.f32.mrb[17].mxu0  ;;  %v4528_v19 = vadd.f32 %v1966_v17, %v340_v45  ;;  %v353_v31 = vld [vmem:[#allocation2 + $0xf8] sm:$0xff] }
 0x213   : > { %v4525_v15 = vadd.f32 %v4524_v14, %v3026_v46 }
 0x214   : > { %3155 = vst.msk [vmem:[#allocation2 + $0x88] sm:$0xff] %vm3137_vm4, %v4523_v58  ;;  %v4272_v24 = vpop.f32.mrb[20].mxu1 }
 0x215   : > { %3154 = vst.msk [vmem:[#allocation2 + $0x80] sm:$0xff] %vm3137_vm4, %v4525_v15  ;;  %v4469_v38 = vpop.f32.mrb[18].mxu0  ;;  %v4530_v49 = vadd.f32 %v4272_v24, %v343_v25  ;;  %v1976_v4 = vpop.f32.mrb[21].mxu1  ;;  %v3174_v25 = vld [vmem:[#allocation2] sm:$0xff] (!%p3733_p3) }
 0x216   : > { %v4527_v47 = vadd.f32 %v4526_v60, %v4469_v38  ;;  %v3036_v35 = vpop.f32.mrb[19].mxu0  ;;  %v4532_v56 = vadd.f32 %v1976_v4, %v342_v29  ;;  %v6277_v29 = vld [vmem:[%s6445_s0] ss:$0 sm:$0xff] (!%p3733_p3)  ;;  %v3175_v38 = vld [vmem:[#allocation2 + $0x8] sm:$0xff] (!%p3733_p3) }
 0x217   : > { %v4529_v48 = vadd.f32 %v4528_v19, %v3036_v35  ;;  %v3213_v24 = vadd.f32 (!%p3733_p3), %v6277_v29, %v3174_v25  ;;  %v3176_v35 = vld [vmem:[#allocation2 + $0x10] sm:$0xff] (!%p3733_p3)  ;;  %v3178_v4 = vld [vmem:[#allocation2 + $0x20] sm:$0xff] (!%p3733_p3) }
 0x218   : > { %3157 = vst.msk [vmem:[#allocation2 + $0x98] sm:$0xff] %vm3137_vm4, %v4527_v47  ;;  %v4275_v1 = vpop.f32.mrb[22].mxu1  ;;  %v3214_v47 = vadd.f32 (!%p3733_p3), %v6277_v29, %v3175_v38 }
 0x219   : > { %3156 = vst.msk [vmem:[#allocation2 + $0x90] sm:$0xff] %vm3137_vm4, %v4529_v48  ;;  %v4472_v0 = vpop.f32.mrb[20].mxu0  ;;  %v4534_v50 = vadd.f32 %v4275_v1, %v345_v11  ;;  %v1986_v62 = vpop.f32.mrb[23].mxu1  ;;  %v3215_v48 = vadd.f32 (!%p3733_p3), %v6277_v29, %v3176_v35  ;;  %v3217_v11 = vadd.f32 (!%p3733_p3), %v6277_v29, %v3178_v4  ;;  %v3181_v1 = vld [vmem:[#allocation2 + $0x38] sm:$0xff] (!%p3733_p3) }
 0x21a   : > { %v4531_v8 = vadd.f32 %v4530_v49, %v4472_v0  ;;  %v3046_v42 = vpop.f32.mrb[21].mxu0  ;;  %v4536_v40 = vadd.f32 %v1986_v62, %v344_v57  ;;  %v3177_v49 = vld [vmem:[#allocation2 + $0x18] sm:$0xff] (!%p3733_p3)  ;;  %v3179_v57 = vld [vmem:[#allocation2 + $0x28] sm:$0xff] (!%p3733_p3)  ;;  %v3180_v0 = vld [vmem:[#allocation2 + $0x30] sm:$0xff] (!%p3733_p3) }
 0x21b   : > { %v4533_v12 = vadd.f32 %v4532_v56, %v3046_v42  ;;  %v3216_v56 = vadd.f32 (!%p3733_p3), %v6277_v29, %v3177_v49  ;;  %v3246_v42 = vmax.f32 (!%p3733_p3), %v3214_v47, 0.0  ;;  %v3219_v62 = vadd.f32 (!%p3733_p3), %v6277_v29, %v3180_v0 }
 0x21c   : > { %3159 = vst.msk [vmem:[#allocation2 + $0xa8] sm:$0xff] %vm3137_vm4, %v4531_v8  ;;  %v4278_v33 = vpop.f32.mrb[24].mxu1  ;;  %v3245_v8 = vmax.f32 (!%p3733_p3), %v3213_v24, 0.0 }
 0x21d   : > { %3158 = vst.msk [vmem:[#allocation2 + $0xa0] sm:$0xff] %vm3137_vm4, %v4533_v12  ;;  %v4475_v37 = vpop.f32.mrb[22].mxu0  ;;  %v4538_v2 = vadd.f32 %v4278_v33, %v347_v53  ;;  %v1996_v28 = vpop.f32.mrb[25].mxu1  ;;  %v3182_v12 = vld [vmem:[#allocation2 + $0x40] sm:$0xff] (!%p3733_p3)  ;;  %v3184_v53 = vld [vmem:[#allocation2 + $0x50] sm:$0xff] (!%p3733_p3)  ;;  %v3249_v33 = vmax.f32 (!%p3733_p3), %v3217_v11, 0.0 }
 0x21e   : > { %v4535_v26 = vadd.f32 %v4534_v50, %v4475_v37  ;;  %v3056_v43 = vpop.f32.mrb[23].mxu0  ;;  %v4540_v54 = vadd.f32 %v1996_v28, %v346_v61  ;;  %v3218_v50 = vadd.f32 (!%p3733_p3), %v6277_v29, %v3179_v57  ;;  %v3247_v61 = vmax.f32 (!%p3733_p3), %v3215_v48, 0.0  ;;  %v3187_v28 = vld [vmem:[#allocation2 + $0x68] sm:$0xff] (!%p3733_p3)  ;;  %3277 = vst.msk [vmem:[%s5111_s19] sm:$0xff] (!%p3733_p3), %vm3137_vm4, %v3245_v8  ;;  %3278 = vst.msk [vmem:[%s5111_s19 + $0x8] sm:$0xff] (!%p3733_p3), %vm3137_vm4, %v3246_v42 }
 0x21f   : > { %v4537_v3 = vadd.f32 %v4536_v40, %v3056_v43  ;;  %v3183_v40 = vld [vmem:[#allocation2 + $0x48] sm:$0xff] (!%p3733_p3)  ;;  %v3248_v37 = vmax.f32 (!%p3733_p3), %v3216_v56, 0.0  ;;  %v3185_v43 = vld [vmem:[#allocation2 + $0x58] sm:$0xff] (!%p3733_p3)  ;;  %3281 = vst.msk [vmem:[%s5111_s19 + $0x20] sm:$0xff] (!%p3733_p3), %vm3137_vm4, %v3249_v33 }
 0x220   : > { %3161 = vst.msk [vmem:[#allocation2 + $0xb8] sm:$0xff] %vm3137_vm4, %v4535_v26  ;;  %v4281_v13 = vpop.f32.mrb[26].mxu1  ;;  %v3220_v26 = vadd.f32 (!%p3733_p3), %v6277_v29, %v3181_v1  ;;  %3279 = vst.msk [vmem:[%s5111_s19 + $0x10] sm:$0xff] (!%p3733_p3), %vm3137_vm4, %v3247_v61 }
 0x221   : > { %3160 = vst.msk [vmem:[#allocation2 + $0xb0] sm:$0xff] %vm3137_vm4, %v4537_v3  ;;  %v4478_v63 = vpop.f32.mrb[24].mxu0  ;;  %v4542_v6 = vadd.f32 %v4281_v13, %v349_v7  ;;  %v2006_v59 = vpop.f32.mrb[27].mxu1  ;;  %v3250_v3 = vmax.f32 (!%p3733_p3), %v3218_v50, 0.0  ;;  %v3221_v7 = vadd.f32 (!%p3733_p3), %v6277_v29, %v3182_v12  ;;  %v3189_v13 = vld [vmem:[#allocation2 + $0x78] sm:$0xff] (!%p3733_p3)  ;;  %3280 = vst.msk [vmem:[%s5111_s19 + $0x18] sm:$0xff] (!%p3733_p3), %vm3137_vm4, %v3248_v37 }
 0x222   : > { %v4539_v36 = vadd.f32 %v4538_v2, %v4478_v63  ;;  %v3066_v34 = vpop.f32.mrb[25].mxu0  ;;  %v4544_v21 = vadd.f32 %v2006_v59, %v348_v27  ;;  %v3186_v2 = vld [vmem:[#allocation2 + $0x60] sm:$0xff] (!%p3733_p3)  ;;  %v3222_v27 = vadd.f32 (!%p3733_p3), %v6277_v29, %v3183_v40  ;;  %v3188_v63 = vld [vmem:[#allocation2 + $0x70] sm:$0xff] (!%p3733_p3) }
 0x223   : > { %v4541_v22 = vadd.f32 %v4540_v54, %v3066_v34  ;;  %v3251_v54 = vmax.f32 (!%p3733_p3), %v3219_v62, 0.0  ;;  %v3223_v34 = vadd.f32 (!%p3733_p3), %v6277_v29, %v3184_v53  ;;  %v3225_v59 = vadd.f32 (!%p3733_p3), %v6277_v29, %v3186_v2  ;;  %3282 = vst.msk [vmem:[%s5111_s19 + $0x28] sm:$0xff] (!%p3733_p3), %vm3137_vm4, %v3250_v3 }
 0x224   : > { %3163 = vst.msk [vmem:[#allocation2 + $0xc8] sm:$0xff] %vm3137_vm4, %v4539_v36  ;;  %v4284_v18 = vpop.f32.mrb[28].mxu1  ;;  %v3252_v36 = vmax.f32 (!%p3733_p3), %v3220_v26, 0.0 }
 0x225   : > { %3162 = vst.msk [vmem:[#allocation2 + $0xc0] sm:$0xff] %vm3137_vm4, %v4541_v22  ;;  %v4481_v41 = vpop.f32.mrb[26].mxu0  ;;  %v4546_v9 = vadd.f32 %v4284_v18, %v351_v16  ;;  %v2016_v55 = vpop.f32.mrb[29].mxu1  ;;  %v3190_v22 = vld [vmem:[#allocation2 + $0x80] sm:$0xff] (!%p3733_p3)  ;;  %3283 = vst.msk [vmem:[%s5111_s19 + $0x30] sm:$0xff] (!%p3733_p3), %vm3137_vm4, %v3251_v54  ;;  %v3253_v16 = vmax.f32 (!%p3733_p3), %v3221_v7, 0.0  ;;  %v3227_v18 = vadd.f32 (!%p3733_p3), %v6277_v29, %v3188_v63 }
 0x226   : > { %v4543_v23 = vadd.f32 %v4542_v6, %v4481_v41  ;;  %v3076_v30 = vpop.f32.mrb[27].mxu0  ;;  %v4548_v20 = vadd.f32 %v2016_v55, %v350_v51  ;;  %v3224_v6 = vadd.f32 (!%p3733_p3), %v6277_v29, %v3185_v43  ;;  %v3254_v51 = vmax.f32 (!%p3733_p3), %v3222_v27, 0.0  ;;  %3284 = vst.msk [vmem:[%s5111_s19 + $0x38] sm:$0xff] (!%p3733_p3), %vm3137_vm4, %v3252_v36 }
 0x227   : > { %v4545_v39 = vadd.f32 %v4544_v21, %v3076_v30  ;;  %v3191_v21 = vld [vmem:[#allocation2 + $0x88] sm:$0xff] (!%p3733_p3)  ;;  %v3226_v41 = vadd.f32 (!%p3733_p3), %v6277_v29, %v3187_v28  ;;  %v3193_v30 = vld [vmem:[#allocation2 + $0x98] sm:$0xff] (!%p3733_p3)  ;;  %v3255_v55 = vmax.f32 (!%p3733_p3), %v3223_v34, 0.0  ;;  %3285 = vst.msk [vmem:[%s5111_s19 + $0x40] sm:$0xff] (!%p3733_p3), %vm3137_vm4, %v3253_v16 }
 0x228   : > { %3165 = vst.msk [vmem:[#allocation2 + $0xd8] sm:$0xff] %vm3137_vm4, %v4543_v23  ;;  %v4287_v14 = vpop.f32.mrb[30].mxu1  ;;  %v3192_v23 = vld [vmem:[#allocation2 + $0x90] sm:$0xff] (!%p3733_p3)  ;;  %3286 = vst.msk [vmem:[%s5111_s19 + $0x48] sm:$0xff] (!%p3733_p3), %vm3137_vm4, %v3254_v51 }
 0x229   : > { %3164 = vst.msk [vmem:[#allocation2 + $0xd0] sm:$0xff] %vm3137_vm4, %v4545_v39  ;;  %v4484_v5 = vpop.f32.mrb[28].mxu0  ;;  %v4550_v52 = vadd.f32 %v4287_v14, %v353_v31  ;;  %v2026_v10 = vpop.f32.mrb[31].mxu1  ;;  %v3256_v39 = vmax.f32 (!%p3733_p3), %v3224_v6, 0.0  ;;  %v3228_v31 = vadd.f32 (!%p3733_p3), %v6277_v29, %v3189_v13  ;;  %v3258_v14 = vmax.f32 (!%p3733_p3), %v3226_v41, 0.0  ;;  %3287 = vst.msk [vmem:[%s5111_s19 + $0x50] sm:$0xff] (!%p3733_p3), %vm3137_vm4, %v3255_v55 }
 0x22a   : > { %v4547_v44 = vadd.f32 %v4546_v9, %v4484_v5  ;;  %v3086_v45 = vpop.f32.mrb[29].mxu0  ;;  %v4552_v46 = vadd.f32 %v2026_v10, %v352_v32  ;;  %v3194_v9 = vld [vmem:[#allocation2 + $0xa0] sm:$0xff] (!%p3733_p3)  ;;  %v3195_v32 = vld [vmem:[#allocation2 + $0xa8] sm:$0xff] (!%p3733_p3)  ;;  %v3196_v5 = vld [vmem:[#allocation2 + $0xb0] sm:$0xff] (!%p3733_p3) }
 0x22b   : > { %v4549_v58 = vadd.f32 %v4548_v20, %v3086_v45  ;;  %3173 = sbr.rel (%p3733_p3) target bundleno = 574 (0x23e), region = 40  ;;  %v3257_v20 = vmax.f32 (!%p3733_p3), %v3225_v59, 0.0  ;;  %v3229_v45 = vadd.f32 (!%p3733_p3), %v6277_v29, %v3190_v22  ;;  %v3197_v10 = vld [vmem:[#allocation2 + $0xb8] sm:$0xff] (!%p3733_p3)  ;;  %3288 = vst.msk [vmem:[%s5111_s19 + $0x58] sm:$0xff] (!%p3733_p3), %vm3137_vm4, %v3256_v39  ;;  %3290 = vst.msk [vmem:[%s5111_s19 + $0x68] sm:$0xff] (!%p3733_p3), %vm3137_vm4, %v3258_v14  ;;  %v3234_v24 = vadd.f32 (!%p3733_p3), %v6277_v29, %v3195_v32 }
 0x22c   : > { %3167 = vst.msk [vmem:[#allocation2 + $0xe8] sm:$0xff] %vm3137_vm4, %v4547_v44  ;;  %v3259_v44 = vmax.f32 (!%p3733_p3), %v3227_v18, 0.0  ;;  %v3235_v47 = vadd.f32 (!%p3733_p3), %v6277_v29, %v3196_v5  ;;  %v3236_v57 = vadd.f32 (!%p3733_p3), %v6277_v29, %v3197_v10 }
 0x22d   : > { %3166 = vst.msk [vmem:[#allocation2 + $0xe0] sm:$0xff] %vm3137_vm4, %v4549_v58  ;;  %v4487_v60 = vpop.f32.mrb[30].mxu0  ;;  %3289 = vst.msk [vmem:[%s5111_s19 + $0x60] sm:$0xff] (!%p3733_p3), %vm3137_vm4, %v3257_v20  ;;  %v3260_v58 = vmax.f32 (!%p3733_p3), %v3228_v31, 0.0  ;;  %v3261_v25 = vmax.f32 (!%p3733_p3), %v3229_v45, 0.0  ;;  %v3266_v8 = vmax.f32 (!%p3733_p3), %v3234_v24, 0.0 }
 0x22e   : > { %v4551_v17 = vadd.f32 %v4550_v52, %v4487_v60  ;;  %v3096_v15 = vpop.f32.mrb[31].mxu0  ;;  %v3230_v52 = vadd.f32 (!%p3733_p3), %v6277_v29, %v3191_v21  ;;  %v3232_v60 = vadd.f32 (!%p3733_p3), %v6277_v29, %v3193_v30  ;;  %3291 = vst.msk [vmem:[%s5111_s19 + $0x70] sm:$0xff] (!%p3733_p3), %vm3137_vm4, %v3259_v44  ;;  %v3267_v42 = vmax.f32 (!%p3733_p3), %v3235_v47, 0.0 }
 0x22f   : > { %v4553_v19 = vadd.f32 %v4552_v46, %v3096_v15  ;;  %v3231_v46 = vadd.f32 (!%p3733_p3), %v6277_v29, %v3192_v23  ;;  %v3198_v15 = vld [vmem:[#allocation2 + $0xc0] sm:$0xff] (!%p3733_p3)  ;;  %v3201_v49 = vld [vmem:[#allocation2 + $0xd8] sm:$0xff] (!%p3733_p3)  ;;  %3292 = vst.msk [vmem:[%s5111_s19 + $0x78] sm:$0xff] (!%p3733_p3), %vm3137_vm4, %v3260_v58  ;;  %3293 = vst.msk [vmem:[%s5111_s19 + $0x80] sm:$0xff] (!%p3733_p3), %vm3137_vm4, %v3261_v25  ;;  %v3268_v40 = vmax.f32 (!%p3733_p3), %v3236_v57, 0.0 }
 0x230   : > { %3169 = vst.msk [vmem:[#allocation2 + $0xf8] sm:$0xff] %vm3137_vm4, %v4551_v17  ;;  %v3233_v17 = vadd.f32 (!%p3733_p3), %v6277_v29, %v3194_v9  ;;  %v3262_v38 = vmax.f32 (!%p3733_p3), %v3230_v52, 0.0  ;;  %v3200_v35 = vld [vmem:[#allocation2 + $0xd0] sm:$0xff] (!%p3733_p3)  ;;  %v3264_v56 = vmax.f32 (!%p3733_p3), %v3232_v60, 0.0  ;;  %v3237_v50 = vadd.f32 (!%p3733_p3), %v6277_v29, %v3198_v15  ;;  %3298 = vst.msk [vmem:[%s5111_s19 + $0xa8] sm:$0xff] (!%p3733_p3), %vm3137_vm4, %v3266_v8 }
 0x231   : > { %3168 = vst.msk [vmem:[#allocation2 + $0xf0] sm:$0xff] %vm3137_vm4, %v4553_v19  ;;  %v3199_v19 = vld [vmem:[#allocation2 + $0xc8] sm:$0xff] (!%p3733_p3)  ;;  %v3263_v48 = vmax.f32 (!%p3733_p3), %v3231_v46, 0.0  ;;  %v3239_v53 = vadd.f32 (!%p3733_p3), %v6277_v29, %v3200_v35  ;;  %v3240_v61 = vadd.f32 (!%p3733_p3), %v6277_v29, %v3201_v49  ;;  %3299 = vst.msk [vmem:[%s5111_s19 + $0xb0] sm:$0xff] (!%p3733_p3), %vm3137_vm4, %v3267_v42 }
 0x232   : > { %v3265_v11 = vmax.f32 %v3233_v17, 0.0  ;;  %3294 = vst.msk [vmem:[%s5111_s19 + $0x88] sm:$0xff] %vm3137_vm4, %v3262_v38  ;;  %v3238_v62 = vadd.f32 %v6277_v29, %v3199_v19  ;;  %3296 = vst.msk [vmem:[%s5111_s19 + $0x98] sm:$0xff] %vm3137_vm4, %v3264_v56  ;;  %v3269_v33 = vmax.f32 %v3237_v50, 0.0 }
 0x233   : > { %v3203_v0 = vld [vmem:[#allocation2 + $0xe8] sm:$0xff]  ;;  %3295 = vst.msk [vmem:[%s5111_s19 + $0x90] sm:$0xff] %vm3137_vm4, %v3263_v48  ;;  %3300 = vst.msk [vmem:[%s5111_s19 + $0xb8] sm:$0xff] %vm3137_vm4, %v3268_v40  ;;  %v3271_v28 = vmax.f32 %v3239_v53, 0.0  ;;  %v3272_v3 = vmax.f32 %v3240_v61, 0.0 }
 0x234   : > { %v3202_v4 = vld [vmem:[#allocation2 + $0xe0] sm:$0xff]  ;;  %3297 = vst.msk [vmem:[%s5111_s19 + $0xa0] sm:$0xff] %vm3137_vm4, %v3265_v11  ;;  %v3270_v26 = vmax.f32 %v3238_v62, 0.0  ;;  %v3242_v43 = vadd.f32 %v6277_v29, %v3203_v0  ;;  %3301 = vst.msk [vmem:[%s5111_s19 + $0xc0] sm:$0xff] %vm3137_vm4, %v3269_v33 }
 0x235   : > { %v3241_v37 = vadd.f32 %v6277_v29, %v3202_v4  ;;  %3303 = vst.msk [vmem:[%s5111_s19 + $0xd0] sm:$0xff] %vm3137_vm4, %v3271_v28  ;;  %3304 = vst.msk [vmem:[%s5111_s19 + $0xd8] sm:$0xff] %vm3137_vm4, %v3272_v3 }
 0x236   : > { %3302 = vst.msk [vmem:[%s5111_s19 + $0xc8] sm:$0xff] %vm3137_vm4, %v3270_v26  ;;  %v3274_v27 = vmax.f32 %v3242_v43, 0.0 }
 0x237   : > { %v3205_v12 = vld [vmem:[#allocation2 + $0xf8] sm:$0xff]  ;;  %v3273_v54 = vmax.f32 %v3241_v37, 0.0 }
 0x238   : > { %v3204_v1 = vld [vmem:[#allocation2 + $0xf0] sm:$0xff]  ;;  %v3244_v7 = vadd.f32 %v6277_v29, %v3205_v12  ;;  %3306 = vst.msk [vmem:[%s5111_s19 + $0xe8] sm:$0xff] %vm3137_vm4, %v3274_v27 }
 0x239   : > { %v3243_v2 = vadd.f32 %v6277_v29, %v3204_v1  ;;  %3305 = vst.msk [vmem:[%s5111_s19 + $0xe0] sm:$0xff] %vm3137_vm4, %v3273_v54 }
 0x23a   : > { %v3276_v13 = vmax.f32 %v3244_v7, 0.0 }
 0x23b   : > { %v3275_v63 = vmax.f32 %v3243_v2, 0.0 }
 0x23c   : > { %3308 = vst.msk [vmem:[%s5111_s19 + $0xf8] sm:$0xff] %vm3137_vm4, %v3276_v13 }
 0x23d   : > { %3307 = vst.msk [vmem:[%s5111_s19 + $0xf0] sm:$0xff] %vm3137_vm4, %v3275_v63 }
 0x23e PF: > { %s3736_s15 = sshll.u32 %s4961_s16, 5  ;;  %s3737_s25 = sshll.u32 %s4965_s17, 8 }
 0x23f   : > { %s3325_s26 = sshll.u32 %s5111_s19, 4  ;;  %s3322_s7 = sadd.s32 %s3737_s25, %s3736_s15  ;;  %s6378_s26 = int_to_ptr.vmem [resolvable:$true] %s3325_s26 }
 0x240   : > { %s3738_s8 = sshll.u32 %s3322_s7, 7  ;;  %s6637_s22 = sand.u32 1, %s4949_s13  }
 0x241   : > { %s6383_s11 = scalar_lea.hbm %s6448_s3, %s3738_s8  ;;  %s6387_s23 = scalar_lea.sflag [#allocation4], %s6637_s22 }
 0x242   : > { %s4871_s29 = scalar_lea.vmem %s6378_s26, 4096  ;;  %s4984_s16 = smov [#allocation3]  }
 0x243   : > { %p4872_p4 = scmp.ne.s32.totalorder %s6378_s26, %s4871_s29  ;;  %s4875_s17 = sshll.u32 %s4984_s16, 4  ;;  %s4876_s17 = int_to_ptr.vmem [resolvable:$false] %s4875_s17 }
 0x244   : > { %s4877_s19 = scalar_lea.vmem %s4876_s17, 8192  ;;  %p4878_p9 = scmp.lt.s32.totalorder %s6378_s26, %s4876_s17 }
 0x245   : > { %p4873_p5 = pnand %p4872_p4, %p5069_p6  ;;  %p4879_p10 = scmp.lt.s32.totalorder %s4877_s19, %s4871_s29 }
 0x247   : > { %p4874_p8 = pneg %p4873_p5  ;;  %p4880_p11 = por %p4879_p10, %p4878_p9 }
 0x249   : > { %p4881_p12 = pnand %p4880_p11, %p4874_p8 }
 0x24b   : > { %4884 = shalt.err (!%p4881_p12)
}
 0x24c   : > { %s4885_s30 = scalar_lea.hbm %s6383_s11, 4096  ;;  %s4889_s20 = scalar_lea.hbm %s6448_s3, 65536 }
 0x24d   : > { %p4886_p13 = scmp.ne.s32.totalorder %s6383_s11, %s4885_s30  ;;  %p4890_p2 = scmp.lt.u32.totalorder %s6383_s11, %s6448_s3 }
 0x24e   : > { %p4891_p3 = scmp.lt.u32.totalorder %s4889_s20, %s4885_s30  ;;  %p4893_p5 = scmp.lt.u32.totalorder %s4885_s30, %s6383_s11 }
 0x24f   : > { %p4887_p0 = pnand %p4886_p13, %p5069_p6 }
 0x250   : > { %p4892_p4 = por %p4891_p3, %p4890_p2 }
 0x251   : > { %p4888_p1 = pneg %p4887_p0 }
 0x252   : > { %p4894_p8 = por %p4893_p5, %p4892_p4 }
 0x254   : > { %p4895_p9 = pnand %p4894_p8, %p4888_p1 }
 0x256   : > { %4898 = shalt.err (!%p4895_p9)
}
 0x257   : > { %s4985_s25 = smov 128   ;;  %s4986_s7 = smov 8  }
 0x258   : > { %4781 = dma.vmem_to_hbm [thread:$0]  (%p5069_p6), %s6378_s26, 4096, %s6383_s11, %s6387_s23, %s4985_s25, %s4985_s25, %s4986_s7  }
 0x259 PF: > { %p4787_p10 = scmp.ge.s32.totalorder %s4981_s21, 2  ;;  %s3340_s8 = sand.u32 1, %s4945_s12  }
 0x25a   : > { %s3341_s9 = scalar_lea.sflag [#allocation4], %s3340_s8 }
 0x25b   : > { %p4784_p11 = pnand %p4787_p10, %p5076_p7 }
 0x25d   : > { %4940 = dma.done.wait (!%p4784_p11), %s3341_s9, 4096  }
 0x25e   : > { %4942 = vsyncadd (!%p4784_p11), %s3341_s9, 4294963200  ;;  %s16_s21 = sadd.s32 1, %s4981_s21   ;;  %s6638_s16 = sld [smem:[#allocation6_spill]] }
 0x25f   : > { %p13_p12 = scmp.ge.s32.totalorder %s16_s21, 50   ;;  %s6639_s17 = sld [smem:[#allocation7_spill]] }
 0x260   : > { %s6640_s27 = sld [smem:[#allocation8_spill]]  ;;  %s6641_s19 = sld [smem:[#allocation9_spill]] }
 0x261   : > { %s6642_s20 = sld [smem:[#allocation10_spill]]  ;;  %s6643_s12 = smov %s4949_s13 }
 0x262   : > { %s6644_s13 = smov %s4953_s14  ;;  %s6645_s14 = smov %s5090_s6 }
 0x263   : > { %s6646_s15 = smov %s4969_s18  ;;  %15 = sbr.rel (!%p13_p12) target bundleno = 6 (0x6), region = 86 }
 0x266   : > { %s6647_s18 = smov %s6640_s27 }
 0x26a   :  { %3346 = vsyncpa [#allocation4], 1 }
 0x26b   :  { %3348 = vsyncpa [#allocation4 + $0x1], 1 }

</bundles_post_ra>
